<compile_context>
chip_gen: v6e
topology: v6e:2x2x1
jax: 0.10.0
libtpu: 0.0.40
codegen_flags: <defaults>
</compile_context>

<pallas_src>
import functools
import math

import jax
import jax.numpy as jnp
from jax.experimental import pallas as pl
from jax.experimental.pallas import tpu as pltpu


def _gnf_fused_inverse_kernel(*refs, masks, fh, feh, num_layers):
    """Fused inverse pass over all GRevNet layers (iterated in reverse order).

    refs layout:
      inputs : x[N,F], e[E,Fe], node_oh[G,N], edge_oh[G,E],
               then per layer: w1n[fh,2H], w2n[2H,2fh], w1e[feh,2H], w2e[2H,2feh]
      outputs: x_out[N,F], e_out[E,Fe], ld_out[G,L]  (columns in reverse layer order)
    """
    n_w = 4 * num_layers
    x_ref, e_ref, node_oh_ref, edge_oh_ref = refs[:4]
    w_refs = refs[4:4 + n_w]
    x_out_ref, e_out_ref, ld_out_ref = refs[4 + n_w:]

    # Load activations / segment matrices once; they stay in vregs/VMEM across layers.
    x = x_ref[...]
    e = e_ref[...]
    node_oh = node_oh_ref[...]
    edge_oh = edge_oh_ref[...]

    # Carry the feature halves as values across layers (no per-layer concatenate).
    x0, x1 = x[:, :fh], x[:, fh:]
    e0, e1 = e[:, :feh], e[:, feh:]

    rows_n = []  # per-layer [N,1] feature-sums of exp(s_n), reverse layer order
    rows_e = []  # per-layer [E,1] feature-sums of exp(s_e)

    for li in range(num_layers - 1, -1, -1):
        mask = masks[li]
        w1n = w_refs[4 * li + 0][...]
        w2n = w_refs[4 * li + 1][...]
        w1e = w_refs[4 * li + 2][...]
        w2e = w_refs[4 * li + 3][...]

        if mask == 0:
            in_n, upd_n = x1, x0
            in_e, upd_e = e1, e0
        else:
            in_n, upd_n = x0, x1
            in_e, upd_e = e0, e1

        # Fused s/t networks: one matmul + one tanh yields both hidden states
        # (w1 = [w1_s | w1_t]); block-diagonal second layer yields [s | t].
        h_n = jnp.tanh(jnp.dot(in_n, w1n, preferred_element_type=jnp.float32))
        st_n = jnp.dot(h_n, w2n, preferred_element_type=jnp.float32)   # [N, 2*fh]
        s_n, t_n = st_n[:, :fh], st_n[:, fh:]

        h_e = jnp.tanh(jnp.dot(in_e, w1e, preferred_element_type=jnp.float32))
        st_e = jnp.dot(h_e, w2e, preferred_element_type=jnp.float32)   # [E, 2*feh]
        s_e, t_e = st_e[:, :feh], st_e[:, feh:]

        exp_s_n = jnp.exp(s_n)
        exp_s_e = jnp.exp(s_e)

        # log|det J| (forward direction, as in the reference: sum of exp(s) per graph):
        # reduce over features first; the segment matvec is batched over layers below.
        rows_n.append(exp_s_n.sum(axis=1, keepdims=True))
        rows_e.append(exp_s_e.sum(axis=1, keepdims=True))

        # Inverse affine coupling; reuse exp(s): exp(-s) == 1/exp(s) (exact reciprocal).
        new_n = (upd_n - t_n) * pl.reciprocal(exp_s_n)
        new_e = (upd_e - t_e) * pl.reciprocal(exp_s_e)

        if mask == 0:
            x0, e0 = new_n, new_e
        else:
            x1, e1 = new_n, new_e

    # Per-graph segment reduction for every layer at once: [G,N]x[N,L] + [G,E]x[E,L],
    # written as a single lane-packed [G, L] store.
    rn = jnp.concatenate(rows_n, axis=1)   # [N, L]
    re = jnp.concatenate(rows_e, axis=1)   # [E, L]
    ld = (jnp.dot(node_oh, rn, preferred_element_type=jnp.float32) +
          jnp.dot(edge_oh, re, preferred_element_type=jnp.float32))   # [G, L]
    ld_out_ref[...] = ld

    # Assemble full feature slabs exactly once and store them.
    x_out_ref[...] = jnp.concatenate([x0, x1], axis=1).astype(x_out_ref.dtype)
    e_out_ref[...] = jnp.concatenate([e0, e1], axis=1).astype(e_out_ref.dtype)


def make_layer_weights(key, fh, feh, hidden):
    """Deterministic weights for one GRevNet layer, pre-packed for the fused kernel:
       w1 = [w1_s | w1_t]  ([half, 2H]),  w2 = blockdiag(w2_s, w2_t)  ([2H, 2*half])."""
    ks = jax.random.split(key, 8)
    scale = 0.1
    ws1n = scale * jax.random.normal(ks[0], (fh, hidden), jnp.float32)
    ws2n = scale * jax.random.normal(ks[1], (hidden, fh), jnp.float32)
    wt1n = scale * jax.random.normal(ks[2], (fh, hidden), jnp.float32)
    wt2n = scale * jax.random.normal(ks[3], (hidden, fh), jnp.float32)
    ws1e = scale * jax.random.normal(ks[4], (feh, hidden), jnp.float32)
    ws2e = scale * jax.random.normal(ks[5], (hidden, feh), jnp.float32)
    wt1e = scale * jax.random.normal(ks[6], (feh, hidden), jnp.float32)
    wt2e = scale * jax.random.normal(ks[7], (hidden, feh), jnp.float32)

    def pack(w1s, w1t, w2s, w2t):
        w1 = jnp.concatenate([w1s, w1t], axis=1)                       # [half, 2H]
        z = jnp.zeros_like(w2s)
        w2 = jnp.concatenate(
            [jnp.concatenate([w2s, z], axis=1),
             jnp.concatenate([z, w2t], axis=1)], axis=0)               # [2H, 2*half]
        return w1, w2

    w1n, w2n = pack(ws1n, wt1n, ws2n, wt2n)
    w1e, w2e = pack(ws1e, wt1e, ws2e, wt2e)
    return (w1n, w2n, w1e, w2e)


def gnf_flow_model_forward(x, edge_attr, batch_idx, edge_membership,
                           num_graphs, layer_weights, masks):
    """
    GNFFlowModel.forward: iterate bijectors in reverse, collecting log|det J| before
    each inverse. Returns ((x_inv, edge_attr_inv), log_det stacked as [L, G]); row 0
    corresponds to the last bijector, matching the reference append order.
    """
    N, F = x.shape
    E, Fe = edge_attr.shape
    fh = math.ceil(F / 2)
    feh = math.ceil(Fe / 2)
    L = len(layer_weights)

    # one-hot segment matrices (JAX glue outside the kernel)
    node_oh = (batch_idx[None, :] == jnp.arange(num_graphs)[:, None]).astype(jnp.float32)
    edge_oh = (edge_membership[None, :] == jnp.arange(num_graphs)[:, None]).astype(jnp.float32)

    flat_w = [w for lw in layer_weights for w in lw]

    kernel = functools.partial(_gnf_fused_inverse_kernel,
                               masks=tuple(masks), fh=fh, feh=feh, num_layers=L)

    full = pl.BlockSpec(memory_space=pltpu.VMEM)
    n_in = 4 + len(flat_w)

    x_out, e_out, ld = pl.pallas_call(
        kernel,
        out_shape=(
            jax.ShapeDtypeStruct((N, F), jnp.float32),
            jax.ShapeDtypeStruct((E, Fe), jnp.float32),
            jax.ShapeDtypeStruct((num_graphs, L), jnp.float32),
        ),
        in_specs=[full] * n_in,
        out_specs=(full, full, full),
    )(x, edge_attr, node_oh, edge_oh, *flat_w)

    # kernel emits [G, L] with columns in reverse-layer order; transpose to [L, G].
    return (x_out, e_out), ld.T


if __name__ == "__main__":
    key = jax.random.PRNGKey(0)

    # small graph batch: 2 graphs, 16 nodes, 32 edges
    N, F = 16, 8          # node features (F even -> halves of F/2)
    E, Fe = 32, 4         # edge features
    G = 2                 # num_graphs
    HIDDEN = 32
    num_layers = 4
    masks = [0, 1, 0, 1]

    k_x, k_e, k_w = jax.random.split(key, 3)
    x = jax.random.normal(k_x, (N, F), jnp.float32)
    edge_attr = jax.random.normal(k_e, (E, Fe), jnp.float32)
    batch_idx = jnp.concatenate([jnp.zeros(N // 2, jnp.int32),
                                 jnp.ones(N - N // 2, jnp.int32)])
    edge_membership = jnp.concatenate([jnp.zeros(E // 2, jnp.int32),
                                       jnp.ones(E - E // 2, jnp.int32)])

    layer_keys = jax.random.split(k_w, num_layers)
    layer_weights = [make_layer_weights(layer_keys[i], F // 2, Fe // 2, HIDDEN)
                     for i in range(num_layers)]

    (x_inv, e_inv), log_dets = gnf_flow_model_forward(
        x, edge_attr, batch_idx, edge_membership, G, layer_weights, masks)

    jax.block_until_ready(x_inv)
    jax.block_until_ready(e_inv)
    jax.block_until_ready(log_dets)

    assert x_inv.shape == (N, F)
    assert e_inv.shape == (E, Fe)
    assert log_dets.shape == (num_layers, G)
    assert bool(jnp.all(jnp.isfinite(x_inv)))
    assert bool(jnp.all(jnp.isfinite(e_inv)))
    assert bool(jnp.all(jnp.isfinite(log_dets)))

    print("KERNEL_OK")
</pallas_src>

<mosaic_0001>
module attributes {stable_mosaic.version = 11 : i64} {
  func.func @_gnf_fused_inverse_kernel(%arg0: memref<16x8xf32, #tpu.memory_space<vmem>>, %arg1: memref<32x4xf32, #tpu.memory_space<vmem>>, %arg2: memref<2x16xf32, #tpu.memory_space<vmem>>, %arg3: memref<2x32xf32, #tpu.memory_space<vmem>>, %arg4: memref<4x64xf32, #tpu.memory_space<vmem>>, %arg5: memref<64x8xf32, #tpu.memory_space<vmem>>, %arg6: memref<2x64xf32, #tpu.memory_space<vmem>>, %arg7: memref<64x4xf32, #tpu.memory_space<vmem>>, %arg8: memref<4x64xf32, #tpu.memory_space<vmem>>, %arg9: memref<64x8xf32, #tpu.memory_space<vmem>>, %arg10: memref<2x64xf32, #tpu.memory_space<vmem>>, %arg11: memref<64x4xf32, #tpu.memory_space<vmem>>, %arg12: memref<4x64xf32, #tpu.memory_space<vmem>>, %arg13: memref<64x8xf32, #tpu.memory_space<vmem>>, %arg14: memref<2x64xf32, #tpu.memory_space<vmem>>, %arg15: memref<64x4xf32, #tpu.memory_space<vmem>>, %arg16: memref<4x64xf32, #tpu.memory_space<vmem>>, %arg17: memref<64x8xf32, #tpu.memory_space<vmem>>, %arg18: memref<2x64xf32, #tpu.memory_space<vmem>>, %arg19: memref<64x4xf32, #tpu.memory_space<vmem>>, %arg20: memref<16x8xf32, #tpu.memory_space<vmem>>, %arg21: memref<32x4xf32, #tpu.memory_space<vmem>>, %arg22: memref<2x4xf32, #tpu.memory_space<vmem>>) attributes {dimension_semantics = [], scalar_prefetch = 0 : i64, scratch_operands = 0 : i64, tpu.core_type = #tpu.core_type<tc>} {
    %c0 = arith.constant 0 : index
    %c0_0 = arith.constant 0 : index
    %0 = vector.load %arg0[%c0, %c0_0] : memref<16x8xf32, #tpu.memory_space<vmem>>, vector<16x8xf32>
    %c0_1 = arith.constant 0 : index
    %c0_2 = arith.constant 0 : index
    %1 = vector.load %arg1[%c0_1, %c0_2] : memref<32x4xf32, #tpu.memory_space<vmem>>, vector<32x4xf32>
    %c0_3 = arith.constant 0 : index
    %c0_4 = arith.constant 0 : index
    %2 = vector.load %arg2[%c0_3, %c0_4] : memref<2x16xf32, #tpu.memory_space<vmem>>, vector<2x16xf32>
    %c0_5 = arith.constant 0 : index
    %c0_6 = arith.constant 0 : index
    %3 = vector.load %arg3[%c0_5, %c0_6] : memref<2x32xf32, #tpu.memory_space<vmem>>, vector<2x32xf32>
    %4 = vector.extract_strided_slice %0 {offsets = [0, 0], sizes = [16, 4], strides = [1, 1]} : vector<16x8xf32> to vector<16x4xf32>
    %5 = vector.extract_strided_slice %0 {offsets = [0, 4], sizes = [16, 4], strides = [1, 1]} : vector<16x8xf32> to vector<16x4xf32>
    %6 = vector.extract_strided_slice %1 {offsets = [0, 0], sizes = [32, 2], strides = [1, 1]} : vector<32x4xf32> to vector<32x2xf32>
    %7 = vector.extract_strided_slice %1 {offsets = [0, 2], sizes = [32, 2], strides = [1, 1]} : vector<32x4xf32> to vector<32x2xf32>
    %c0_7 = arith.constant 0 : index
    %c0_8 = arith.constant 0 : index
    %8 = vector.load %arg16[%c0_7, %c0_8] : memref<4x64xf32, #tpu.memory_space<vmem>>, vector<4x64xf32>
    %c0_9 = arith.constant 0 : index
    %c0_10 = arith.constant 0 : index
    %9 = vector.load %arg17[%c0_9, %c0_10] : memref<64x8xf32, #tpu.memory_space<vmem>>, vector<64x8xf32>
    %c0_11 = arith.constant 0 : index
    %c0_12 = arith.constant 0 : index
    %10 = vector.load %arg18[%c0_11, %c0_12] : memref<2x64xf32, #tpu.memory_space<vmem>>, vector<2x64xf32>
    %c0_13 = arith.constant 0 : index
    %c0_14 = arith.constant 0 : index
    %11 = vector.load %arg19[%c0_13, %c0_14] : memref<64x4xf32, #tpu.memory_space<vmem>>, vector<64x4xf32>
    %cst = arith.constant dense<0.000000e+00> : vector<16x64xf32>
    %12 = tpu.matmul %4, %8, %cst {dimension_numbers = #tpu.dot_dimension_numbers<[1], [0], [0], [1], [0, 0, 1, 1], [], []>} : vector<16x4xf32>, vector<4x64xf32>, vector<16x64xf32> -> vector<16x64xf32>
    %13 = math.tanh %12 : vector<16x64xf32>
    %cst_15 = arith.constant dense<0.000000e+00> : vector<16x8xf32>
    %14 = tpu.matmul %13, %9, %cst_15 {dimension_numbers = #tpu.dot_dimension_numbers<[1], [0], [0], [1], [0, 0, 1, 1], [], []>} : vector<16x64xf32>, vector<64x8xf32>, vector<16x8xf32> -> vector<16x8xf32>
    %15 = vector.extract_strided_slice %14 {offsets = [0, 0], sizes = [16, 4], strides = [1, 1]} : vector<16x8xf32> to vector<16x4xf32>
    %16 = vector.extract_strided_slice %14 {offsets = [0, 4], sizes = [16, 4], strides = [1, 1]} : vector<16x8xf32> to vector<16x4xf32>
    %cst_16 = arith.constant dense<0.000000e+00> : vector<32x64xf32>
    %17 = tpu.matmul %6, %10, %cst_16 {dimension_numbers = #tpu.dot_dimension_numbers<[1], [0], [0], [1], [0, 0, 1, 1], [], []>} : vector<32x2xf32>, vector<2x64xf32>, vector<32x64xf32> -> vector<32x64xf32>
    %18 = math.tanh %17 : vector<32x64xf32>
    %cst_17 = arith.constant dense<0.000000e+00> : vector<32x4xf32>
    %19 = tpu.matmul %18, %11, %cst_17 {dimension_numbers = #tpu.dot_dimension_numbers<[1], [0], [0], [1], [0, 0, 1, 1], [], []>} : vector<32x64xf32>, vector<64x4xf32>, vector<32x4xf32> -> vector<32x4xf32>
    %20 = vector.extract_strided_slice %19 {offsets = [0, 0], sizes = [32, 2], strides = [1, 1]} : vector<32x4xf32> to vector<32x2xf32>
    %21 = vector.extract_strided_slice %19 {offsets = [0, 2], sizes = [32, 2], strides = [1, 1]} : vector<32x4xf32> to vector<32x2xf32>
    %22 = math.exp %15 : vector<16x4xf32>
    %23 = math.exp %20 : vector<32x2xf32>
    %cst_18 = arith.constant dense<0.000000e+00> : vector<16xf32>
    %24 = vector.multi_reduction <add>, %22, %cst_18 [1] : vector<16x4xf32> to vector<16xf32>
    %25 = vector.shape_cast %24 : vector<16xf32> to vector<16x1xf32>
    %cst_19 = arith.constant dense<0.000000e+00> : vector<32xf32>
    %26 = vector.multi_reduction <add>, %23, %cst_19 [1] : vector<32x2xf32> to vector<32xf32>
    %27 = vector.shape_cast %26 : vector<32xf32> to vector<32x1xf32>
    %28 = arith.subf %5, %16 : vector<16x4xf32>
    %29 = tpu.reciprocal %22 : vector<16x4xf32> -> vector<16x4xf32>
    %30 = arith.mulf %28, %29 : vector<16x4xf32>
    %31 = arith.subf %7, %21 : vector<32x2xf32>
    %32 = tpu.reciprocal %23 : vector<32x2xf32> -> vector<32x2xf32>
    %33 = arith.mulf %31, %32 : vector<32x2xf32>
    %c0_20 = arith.constant 0 : index
    %c0_21 = arith.constant 0 : index
    %34 = vector.load %arg12[%c0_20, %c0_21] : memref<4x64xf32, #tpu.memory_space<vmem>>, vector<4x64xf32>
    %c0_22 = arith.constant 0 : index
    %c0_23 = arith.constant 0 : index
    %35 = vector.load %arg13[%c0_22, %c0_23] : memref<64x8xf32, #tpu.memory_space<vmem>>, vector<64x8xf32>
    %c0_24 = arith.constant 0 : index
    %c0_25 = arith.constant 0 : index
    %36 = vector.load %arg14[%c0_24, %c0_25] : memref<2x64xf32, #tpu.memory_space<vmem>>, vector<2x64xf32>
    %c0_26 = arith.constant 0 : index
    %c0_27 = arith.constant 0 : index
    %37 = vector.load %arg15[%c0_26, %c0_27] : memref<64x4xf32, #tpu.memory_space<vmem>>, vector<64x4xf32>
    %cst_28 = arith.constant dense<0.000000e+00> : vector<16x64xf32>
    %38 = tpu.matmul %30, %34, %cst_28 {dimension_numbers = #tpu.dot_dimension_numbers<[1], [0], [0], [1], [0, 0, 1, 1], [], []>} : vector<16x4xf32>, vector<4x64xf32>, vector<16x64xf32> -> vector<16x64xf32>
    %39 = math.tanh %38 : vector<16x64xf32>
    %cst_29 = arith.constant dense<0.000000e+00> : vector<16x8xf32>
    %40 = tpu.matmul %39, %35, %cst_29 {dimension_numbers = #tpu.dot_dimension_numbers<[1], [0], [0], [1], [0, 0, 1, 1], [], []>} : vector<16x64xf32>, vector<64x8xf32>, vector<16x8xf32> -> vector<16x8xf32>
    %41 = vector.extract_strided_slice %40 {offsets = [0, 0], sizes = [16, 4], strides = [1, 1]} : vector<16x8xf32> to vector<16x4xf32>
    %42 = vector.extract_strided_slice %40 {offsets = [0, 4], sizes = [16, 4], strides = [1, 1]} : vector<16x8xf32> to vector<16x4xf32>
    %cst_30 = arith.constant dense<0.000000e+00> : vector<32x64xf32>
    %43 = tpu.matmul %33, %36, %cst_30 {dimension_numbers = #tpu.dot_dimension_numbers<[1], [0], [0], [1], [0, 0, 1, 1], [], []>} : vector<32x2xf32>, vector<2x64xf32>, vector<32x64xf32> -> vector<32x64xf32>
    %44 = math.tanh %43 : vector<32x64xf32>
    %cst_31 = arith.constant dense<0.000000e+00> : vector<32x4xf32>
    %45 = tpu.matmul %44, %37, %cst_31 {dimension_numbers = #tpu.dot_dimension_numbers<[1], [0], [0], [1], [0, 0, 1, 1], [], []>} : vector<32x64xf32>, vector<64x4xf32>, vector<32x4xf32> -> vector<32x4xf32>
    %46 = vector.extract_strided_slice %45 {offsets = [0, 0], sizes = [32, 2], strides = [1, 1]} : vector<32x4xf32> to vector<32x2xf32>
    %47 = vector.extract_strided_slice %45 {offsets = [0, 2], sizes = [32, 2], strides = [1, 1]} : vector<32x4xf32> to vector<32x2xf32>
    %48 = math.exp %41 : vector<16x4xf32>
    %49 = math.exp %46 : vector<32x2xf32>
    %cst_32 = arith.constant dense<0.000000e+00> : vector<16xf32>
    %50 = vector.multi_reduction <add>, %48, %cst_32 [1] : vector<16x4xf32> to vector<16xf32>
    %51 = vector.shape_cast %50 : vector<16xf32> to vector<16x1xf32>
    %cst_33 = arith.constant dense<0.000000e+00> : vector<32xf32>
    %52 = vector.multi_reduction <add>, %49, %cst_33 [1] : vector<32x2xf32> to vector<32xf32>
    %53 = vector.shape_cast %52 : vector<32xf32> to vector<32x1xf32>
    %54 = arith.subf %4, %42 : vector<16x4xf32>
    %55 = tpu.reciprocal %48 : vector<16x4xf32> -> vector<16x4xf32>
    %56 = arith.mulf %54, %55 : vector<16x4xf32>
    %57 = arith.subf %6, %47 : vector<32x2xf32>
    %58 = tpu.reciprocal %49 : vector<32x2xf32> -> vector<32x2xf32>
    %59 = arith.mulf %57, %58 : vector<32x2xf32>
    %c0_34 = arith.constant 0 : index
    %c0_35 = arith.constant 0 : index
    %60 = vector.load %arg8[%c0_34, %c0_35] : memref<4x64xf32, #tpu.memory_space<vmem>>, vector<4x64xf32>
    %c0_36 = arith.constant 0 : index
    %c0_37 = arith.constant 0 : index
    %61 = vector.load %arg9[%c0_36, %c0_37] : memref<64x8xf32, #tpu.memory_space<vmem>>, vector<64x8xf32>
    %c0_38 = arith.constant 0 : index
    %c0_39 = arith.constant 0 : index
    %62 = vector.load %arg10[%c0_38, %c0_39] : memref<2x64xf32, #tpu.memory_space<vmem>>, vector<2x64xf32>
    %c0_40 = arith.constant 0 : index
    %c0_41 = arith.constant 0 : index
    %63 = vector.load %arg11[%c0_40, %c0_41] : memref<64x4xf32, #tpu.memory_space<vmem>>, vector<64x4xf32>
    %cst_42 = arith.constant dense<0.000000e+00> : vector<16x64xf32>
    %64 = tpu.matmul %56, %60, %cst_42 {dimension_numbers = #tpu.dot_dimension_numbers<[1], [0], [0], [1], [0, 0, 1, 1], [], []>} : vector<16x4xf32>, vector<4x64xf32>, vector<16x64xf32> -> vector<16x64xf32>
    %65 = math.tanh %64 : vector<16x64xf32>
    %cst_43 = arith.constant dense<0.000000e+00> : vector<16x8xf32>
    %66 = tpu.matmul %65, %61, %cst_43 {dimension_numbers = #tpu.dot_dimension_numbers<[1], [0], [0], [1], [0, 0, 1, 1], [], []>} : vector<16x64xf32>, vector<64x8xf32>, vector<16x8xf32> -> vector<16x8xf32>
    %67 = vector.extract_strided_slice %66 {offsets = [0, 0], sizes = [16, 4], strides = [1, 1]} : vector<16x8xf32> to vector<16x4xf32>
    %68 = vector.extract_strided_slice %66 {offsets = [0, 4], sizes = [16, 4], strides = [1, 1]} : vector<16x8xf32> to vector<16x4xf32>
    %cst_44 = arith.constant dense<0.000000e+00> : vector<32x64xf32>
    %69 = tpu.matmul %59, %62, %cst_44 {dimension_numbers = #tpu.dot_dimension_numbers<[1], [0], [0], [1], [0, 0, 1, 1], [], []>} : vector<32x2xf32>, vector<2x64xf32>, vector<32x64xf32> -> vector<32x64xf32>
    %70 = math.tanh %69 : vector<32x64xf32>
    %cst_45 = arith.constant dense<0.000000e+00> : vector<32x4xf32>
    %71 = tpu.matmul %70, %63, %cst_45 {dimension_numbers = #tpu.dot_dimension_numbers<[1], [0], [0], [1], [0, 0, 1, 1], [], []>} : vector<32x64xf32>, vector<64x4xf32>, vector<32x4xf32> -> vector<32x4xf32>
    %72 = vector.extract_strided_slice %71 {offsets = [0, 0], sizes = [32, 2], strides = [1, 1]} : vector<32x4xf32> to vector<32x2xf32>
    %73 = vector.extract_strided_slice %71 {offsets = [0, 2], sizes = [32, 2], strides = [1, 1]} : vector<32x4xf32> to vector<32x2xf32>
    %74 = math.exp %67 : vector<16x4xf32>
    %75 = math.exp %72 : vector<32x2xf32>
    %cst_46 = arith.constant dense<0.000000e+00> : vector<16xf32>
    %76 = vector.multi_reduction <add>, %74, %cst_46 [1] : vector<16x4xf32> to vector<16xf32>
    %77 = vector.shape_cast %76 : vector<16xf32> to vector<16x1xf32>
    %cst_47 = arith.constant dense<0.000000e+00> : vector<32xf32>
    %78 = vector.multi_reduction <add>, %75, %cst_47 [1] : vector<32x2xf32> to vector<32xf32>
    %79 = vector.shape_cast %78 : vector<32xf32> to vector<32x1xf32>
    %80 = arith.subf %30, %68 : vector<16x4xf32>
    %81 = tpu.reciprocal %74 : vector<16x4xf32> -> vector<16x4xf32>
    %82 = arith.mulf %80, %81 : vector<16x4xf32>
    %83 = arith.subf %33, %73 : vector<32x2xf32>
    %84 = tpu.reciprocal %75 : vector<32x2xf32> -> vector<32x2xf32>
    %85 = arith.mulf %83, %84 : vector<32x2xf32>
    %c0_48 = arith.constant 0 : index
    %c0_49 = arith.constant 0 : index
    %86 = vector.load %arg4[%c0_48, %c0_49] : memref<4x64xf32, #tpu.memory_space<vmem>>, vector<4x64xf32>
    %c0_50 = arith.constant 0 : index
    %c0_51 = arith.constant 0 : index
    %87 = vector.load %arg5[%c0_50, %c0_51] : memref<64x8xf32, #tpu.memory_space<vmem>>, vector<64x8xf32>
    %c0_52 = arith.constant 0 : index
    %c0_53 = arith.constant 0 : index
    %88 = vector.load %arg6[%c0_52, %c0_53] : memref<2x64xf32, #tpu.memory_space<vmem>>, vector<2x64xf32>
    %c0_54 = arith.constant 0 : index
    %c0_55 = arith.constant 0 : index
    %89 = vector.load %arg7[%c0_54, %c0_55] : memref<64x4xf32, #tpu.memory_space<vmem>>, vector<64x4xf32>
    %cst_56 = arith.constant dense<0.000000e+00> : vector<16x64xf32>
    %90 = tpu.matmul %82, %86, %cst_56 {dimension_numbers = #tpu.dot_dimension_numbers<[1], [0], [0], [1], [0, 0, 1, 1], [], []>} : vector<16x4xf32>, vector<4x64xf32>, vector<16x64xf32> -> vector<16x64xf32>
    %91 = math.tanh %90 : vector<16x64xf32>
    %cst_57 = arith.constant dense<0.000000e+00> : vector<16x8xf32>
    %92 = tpu.matmul %91, %87, %cst_57 {dimension_numbers = #tpu.dot_dimension_numbers<[1], [0], [0], [1], [0, 0, 1, 1], [], []>} : vector<16x64xf32>, vector<64x8xf32>, vector<16x8xf32> -> vector<16x8xf32>
    %93 = vector.extract_strided_slice %92 {offsets = [0, 0], sizes = [16, 4], strides = [1, 1]} : vector<16x8xf32> to vector<16x4xf32>
    %94 = vector.extract_strided_slice %92 {offsets = [0, 4], sizes = [16, 4], strides = [1, 1]} : vector<16x8xf32> to vector<16x4xf32>
    %cst_58 = arith.constant dense<0.000000e+00> : vector<32x64xf32>
    %95 = tpu.matmul %85, %88, %cst_58 {dimension_numbers = #tpu.dot_dimension_numbers<[1], [0], [0], [1], [0, 0, 1, 1], [], []>} : vector<32x2xf32>, vector<2x64xf32>, vector<32x64xf32> -> vector<32x64xf32>
    %96 = math.tanh %95 : vector<32x64xf32>
    %cst_59 = arith.constant dense<0.000000e+00> : vector<32x4xf32>
    %97 = tpu.matmul %96, %89, %cst_59 {dimension_numbers = #tpu.dot_dimension_numbers<[1], [0], [0], [1], [0, 0, 1, 1], [], []>} : vector<32x64xf32>, vector<64x4xf32>, vector<32x4xf32> -> vector<32x4xf32>
    %98 = vector.extract_strided_slice %97 {offsets = [0, 0], sizes = [32, 2], strides = [1, 1]} : vector<32x4xf32> to vector<32x2xf32>
    %99 = vector.extract_strided_slice %97 {offsets = [0, 2], sizes = [32, 2], strides = [1, 1]} : vector<32x4xf32> to vector<32x2xf32>
    %100 = math.exp %93 : vector<16x4xf32>
    %101 = math.exp %98 : vector<32x2xf32>
    %cst_60 = arith.constant dense<0.000000e+00> : vector<16xf32>
    %102 = vector.multi_reduction <add>, %100, %cst_60 [1] : vector<16x4xf32> to vector<16xf32>
    %103 = vector.shape_cast %102 : vector<16xf32> to vector<16x1xf32>
    %cst_61 = arith.constant dense<0.000000e+00> : vector<32xf32>
    %104 = vector.multi_reduction <add>, %101, %cst_61 [1] : vector<32x2xf32> to vector<32xf32>
    %105 = vector.shape_cast %104 : vector<32xf32> to vector<32x1xf32>
    %106 = arith.subf %56, %94 : vector<16x4xf32>
    %107 = tpu.reciprocal %100 : vector<16x4xf32> -> vector<16x4xf32>
    %108 = arith.mulf %106, %107 : vector<16x4xf32>
    %109 = arith.subf %59, %99 : vector<32x2xf32>
    %110 = tpu.reciprocal %101 : vector<32x2xf32> -> vector<32x2xf32>
    %111 = arith.mulf %109, %110 : vector<32x2xf32>
    %112 = tpu.concatenate %25, %51, %77, %103 in 1 : vector<16x1xf32>, vector<16x1xf32>, vector<16x1xf32>, vector<16x1xf32> -> vector<16x4xf32>
    %113 = tpu.concatenate %27, %53, %79, %105 in 1 : vector<32x1xf32>, vector<32x1xf32>, vector<32x1xf32>, vector<32x1xf32> -> vector<32x4xf32>
    %cst_62 = arith.constant dense<0.000000e+00> : vector<2x4xf32>
    %114 = tpu.matmul %2, %112, %cst_62 {dimension_numbers = #tpu.dot_dimension_numbers<[1], [0], [0], [1], [0, 0, 1, 1], [], []>} : vector<2x16xf32>, vector<16x4xf32>, vector<2x4xf32> -> vector<2x4xf32>
    %cst_63 = arith.constant dense<0.000000e+00> : vector<2x4xf32>
    %115 = tpu.matmul %3, %113, %cst_63 {dimension_numbers = #tpu.dot_dimension_numbers<[1], [0], [0], [1], [0, 0, 1, 1], [], []>} : vector<2x32xf32>, vector<32x4xf32>, vector<2x4xf32> -> vector<2x4xf32>
    %116 = arith.addf %114, %115 : vector<2x4xf32>
    %c0_64 = arith.constant 0 : index
    %c0_65 = arith.constant 0 : index
    %117 = vector.load %arg22[%c0_64, %c0_65] : memref<2x4xf32, #tpu.memory_space<vmem>>, vector<2x4xf32>
    tpu.vector_store %arg22[%c0_64, %c0_65], %116 {strides = array<i32>} : memref<2x4xf32, #tpu.memory_space<vmem>>, vector<2x4xf32>,
    %118 = tpu.concatenate %108, %82 in 1 : vector<16x4xf32>, vector<16x4xf32> -> vector<16x8xf32>
    %c0_66 = arith.constant 0 : index
    %c0_67 = arith.constant 0 : index
    %119 = vector.load %arg20[%c0_66, %c0_67] : memref<16x8xf32, #tpu.memory_space<vmem>>, vector<16x8xf32>
    tpu.vector_store %arg20[%c0_66, %c0_67], %118 {strides = array<i32>} : memref<16x8xf32, #tpu.memory_space<vmem>>, vector<16x8xf32>,
    %120 = tpu.concatenate %111, %85 in 1 : vector<32x2xf32>, vector<32x2xf32> -> vector<32x4xf32>
    %c0_68 = arith.constant 0 : index
    %c0_69 = arith.constant 0 : index
    %121 = vector.load %arg21[%c0_68, %c0_69] : memref<32x4xf32, #tpu.memory_space<vmem>>, vector<32x4xf32>
    tpu.vector_store %arg21[%c0_68, %c0_69], %120 {strides = array<i32>} : memref<32x4xf32, #tpu.memory_space<vmem>>, vector<32x4xf32>,
    return
  }
}

</mosaic_0001>

<bundles_post_ra>
// kernel: tpu_custom_call.1
= control target key start
LH: loop header
LB: loop body
LE: loop exit
PB: predicated region body
PF: predicated region fallthrough
CT: control target
= control target key end

     0   :  { %s3482_s0 = inlined_call_operand.vmem [shape: f32[16,8], index: 0, kind: input, shape index: {}]   ;;  %s3483_s1 = inlined_call_operand.vmem [shape: f32[32,4], index: 1, kind: input, shape index: {}]   ;;  %s3484_s2 = inlined_call_operand.vmem [shape: f32[2,16], index: 2, kind: input, shape index: {}]   ;;  %s3485_s3 = inlined_call_operand.vmem [shape: f32[2,32], index: 3, kind: input, shape index: {}]   ;;  %s3486_s4 = inlined_call_operand.vmem [shape: f32[4,64], index: 4, kind: input, shape index: {}]   ;;  %s3487_s5 = inlined_call_operand.vmem [shape: f32[64,8], index: 5, kind: input, shape index: {}]   ;;  %s3488_s6 = inlined_call_operand.vmem [shape: f32[2,64], index: 6, kind: input, shape index: {}]   ;;  %s3489_s7 = inlined_call_operand.vmem [shape: f32[64,4], index: 7, kind: input, shape index: {}]   ;;  %s3490_s8 = inlined_call_operand.vmem [shape: f32[4,64], index: 8, kind: input, shape index: {}]   ;;  %s3491_s9 = inlined_call_operand.vmem [shape: f32[64,8], index: 9, kind: input, shape index: {}]   ;;  %s3492_s10 = inlined_call_operand.vmem [shape: f32[2,64], index: 10, kind: input, shape index: {}]   ;;  %s3493_s11 = inlined_call_operand.vmem [shape: f32[64,4], index: 11, kind: input, shape index: {}]   ;;  %s3494_s12 = inlined_call_operand.vmem [shape: f32[4,64], index: 12, kind: input, shape index: {}]   ;;  %s3495_s13 = inlined_call_operand.vmem [shape: f32[64,8], index: 13, kind: input, shape index: {}]   ;;  %s3496_s14 = inlined_call_operand.vmem [shape: f32[2,64], index: 14, kind: input, shape index: {}]   ;;  %s3497_s15 = inlined_call_operand.vmem [shape: f32[64,4], index: 15, kind: input, shape index: {}]   ;;  %s3498_s16 = inlined_call_operand.vmem [shape: f32[4,64], index: 16, kind: input, shape index: {}]   ;;  %s3499_s17 = inlined_call_operand.vmem [shape: f32[64,8], index: 17, kind: input, shape index: {}]   ;;  %s3500_s18 = inlined_call_operand.vmem [shape: f32[2,64], index: 18, kind: input, shape index: {}]   ;;  %s3501_s19 = inlined_call_operand.vmem [shape: f32[64,4], index: 19, kind: input, shape index: {}]   ;;  %s3502_s20 = inlined_call_operand.vmem [shape: f32[16,8], index: 20, kind: output, shape index: {0}]   ;;  %s3503_s21 = inlined_call_operand.vmem [shape: f32[32,4], index: 21, kind: output, shape index: {1}]   ;;  %s3504_s22 = inlined_call_operand.hbm [shape: f32[2,4], index: 22, kind: output, shape index: {2}]  }
   0x1   :  { %3508 = sst [smem:[#allocation5_spill]] %s3482_s0 }
   0x2   :  { %3509 = sst [smem:[#allocation6_spill]] %s3483_s1 }
   0x3   :  { %3510 = sst [smem:[#allocation7_spill]] %s3484_s2 }
   0x4   :  { %3511 = sst [smem:[#allocation8_spill]] %s3485_s3 }
   0x5   :  { %3512 = sst [smem:[#allocation9_spill]] %s3486_s4 }
   0x6   :  { %3513 = sst [smem:[#allocation10_spill]] %s3487_s5 }
   0x7   :  { %3514 = sst [smem:[#allocation11_spill]] %s3488_s6 }
   0x8   :  { %v77_v0 = vld [vmem:[%s3498_s16] sm:$0xf]  ;;  %vm102_vm0 = vcmask 1043456   ;;  %s3515_s4 = sld [smem:[#allocation5_spill]]  ;;  %vm95_vm1 = vcmask 31744   ;;  %vm278_vm2 = vcmask 1041408  }
   0x9   :  { %2329 = vmatprep.subr.msk.mxu0 %vm102_vm0, %v77_v0  ;;  %v86_v3 = vld [vmem:[%s3500_s18] sm:$0x3]  ;;  %s3516_s6 = sld [smem:[#allocation6_spill]]  ;;  %vm265_vm3 = vcmask 15360  }
   0xa   :  { %2330 = vmatpush3.msk.msra.mxu0 %vm102_vm0, %v77_v0 }
   0xe   :  { %v2864_v1 = vld [vmem:[%s3515_s4] sm:$0xff]  ;;  %v2869_v2 = vld [vmem:[%s3515_s4 + $0x8] sm:$0xff] }
   0xf   :  { %2331 = vmatprep.mubr.msk.f32.mxu0 %vm95_vm1, %v2864_v1  ;;  %v2880_v4 = vld [vmem:[%s3516_s6] sm:$0xff] }
  0x10   :  { %28 = vsyncpa [#allocation3], 0  ;;  %2332 = vmatmul.mubr.msk.f32.vlgmr.msra.gmra.mxu0 %vm95_vm1, %v2869_v2  ;;  %2353 = vmatprep.subr.msk.mxu0 %vm278_vm2, %v86_v3  ;;  %v2892_v5 = vld [vmem:[%s3516_s6 + $0x8] sm:$0xff]  ;;  %v2897_v6 = vld [vmem:[%s3516_s6 + $0x10] sm:$0xff]  ;;  %vm183_vm4 = vcmask 523264   ;;  %s2737_s3 = smov 2  }
  0x11   :  { %2354 = vmatpush3.msk.msra.mxu0 %vm278_vm2, %v86_v3  ;;  %2355 = vmatprep.mubr.msk.f32.mxu0 %vm265_vm3, %v2880_v4  ;;  %v2906_v7 = vld [vmem:[%s3516_s6 + $0x18] sm:$0xff]  ;;  %v84_v9 = vld [vmem:[%s3499_s17 + $0x30] sm:$0xff]  ;;  %v83_v10 = vld [vmem:[%s3499_s17 + $0x28] sm:$0xff]  ;;  %s2738_s29 = smov 124   ;;  %s3517_s18 = sld [smem:[#allocation9_spill]]  ;;  %vm1938_vm5 = vcmask 7168  }
  0x12   :  { %v85_v8 = vld [vmem:[%s3499_s17 + $0x38] sm:$0xff]  ;;  %v82_v12 = vld [vmem:[%s3499_s17 + $0x20] sm:$0xff]  ;;  %v93_v13 = vld [vmem:[%s3501_s19 + $0x30] sm:$0xff]  ;;  %s3518_s26 = sld [smem:[#allocation11_spill]]  ;;  %vm2741_vm6 = vmmov 0   ;;  %vm2110_vm7 = vcmask 64512  }
  0x13   :  { %2334 = vmatprep.subr.mxu1 %v85_v8  ;;  %v94_v11 = vld [vmem:[%s3501_s19 + $0x38] sm:$0xff]  ;;  %v92_v15 = vld [vmem:[%s3501_s19 + $0x28] sm:$0xff]  ;;  %v80_v16 = vld [vmem:[%s3499_s17 + $0x10] sm:$0xff]  ;;  %vm1943_vm8 = vcmask 23552   ;;  %s3520_s5 = sld [smem:[#allocation8_spill]]  ;;  %vm1958_vm9 = vcmask 261120  }
  0x14   :  { %2356 = vmatmul.mubr.msk.f32.vlgmr.msra.gmra.mxu0 %vm265_vm3, %v2892_v5  ;;  %2335 = vmatpush3.msra.mxu1 %v85_v8  ;;  %v81_v14 = vld [vmem:[%s3499_s17 + $0x18] sm:$0xff]  ;;  %v91_v17 = vld [vmem:[%s3501_s19 + $0x20] sm:$0xff]  ;;  %v79_v18 = vld [vmem:[%s3499_s17 + $0x8] sm:$0xff]  ;;  %s3521_s6 = sld [smem:[#allocation7_spill]]  ;;  %vm2032_vm10 = vcmask 130048   ;;  %s2742_s25 = smov [#allocation2]  }
  0x15   :  { %2358 = vmatprep.mubr.msk.f32.mxu0 %vm265_vm3, %v2897_v6  ;;  %2336 = vmatprep.subr.mxu1 %v84_v9  ;;  %v90_v19 = vld [vmem:[%s3501_s19 + $0x18] sm:$0xff]  ;;  %v78_v20 = vld [vmem:[%s3499_s17] sm:$0xff]  ;;  %v89_v21 = vld [vmem:[%s3501_s19 + $0x10] sm:$0xff]  ;;  %s2736_s17 = smov 4   ;;  %vm2106_vm11 = vcmask 25600  }
  0x16   :  { %2337 = vmatpush3.msra.mxu1 %v84_v9  ;;  %2361 = vmatprep.subr.mxu0 %v94_v11  ;;  %v88_v22 = vld [vmem:[%s3501_s19 + $0x8] sm:$0xff]  ;;  %v87_v23 = vld [vmem:[%s3501_s19] sm:$0xff]  ;;  %s3519_s19 = sld [smem:[#allocation10_spill]] }
  0x17   :  { %2338 = vmatprep.subr.mxu1 %v83_v10  ;;  %2362 = vmatpush3.msra.mxu0 %v94_v11  ;;  %v540_v55 = vld [vmem:[%s3494_s12] sm:$0xf] }
  0x18   :  { %2359 = vmatmul.mubr.msk.f32.gmra.mxu0 %vm265_vm3, %v2906_v7  ;;  %2339 = vmatpush3.msra.mxu1 %v83_v10  ;;  %v549_v61 = vld [vmem:[%s3496_s14] sm:$0x3]  ;;  %s2739_s14 = smov 126  }
  0x19   :  { %2340 = vmatprep.subr.mxu1 %v82_v12  ;;  %2363 = vmatprep.subr.mxu0 %v93_v13 }
  0x1a   :  { %2341 = vmatpush3.msra.mxu1 %v82_v12  ;;  %2364 = vmatpush3.msra.mxu0 %v93_v13 }
  0x1b   :  { %2342 = vmatprep.subr.mxu1 %v81_v14  ;;  %2365 = vmatprep.subr.mxu0 %v92_v15 }
  0x1c   :  { %2343 = vmatpush3.msra.mxu1 %v81_v14  ;;  %2366 = vmatpush3.msra.mxu0 %v92_v15 }
  0x1d   :  { %2344 = vmatprep.subr.mxu1 %v80_v16  ;;  %2367 = vmatprep.subr.mxu0 %v91_v17 }
  0x1e   :  { %2345 = vmatpush3.msra.mxu1 %v80_v16  ;;  %2368 = vmatpush3.msra.mxu0 %v91_v17 }
  0x1f   :  { %2346 = vmatprep.subr.mxu1 %v79_v18  ;;  %2369 = vmatprep.subr.mxu0 %v90_v19 }
  0x20   :  { %2347 = vmatpush3.msra.mxu1 %v79_v18  ;;  %2370 = vmatpush3.msra.mxu0 %v90_v19 }
  0x21   :  { %2348 = vmatprep.subr.mxu1 %v78_v20  ;;  %2371 = vmatprep.subr.mxu0 %v89_v21 }
  0x22   :  { %2349 = vmatpush3.msra.mxu1 %v78_v20  ;;  %2372 = vmatpush3.msra.mxu0 %v89_v21 }
  0x23   :  { %2373 = vmatprep.subr.mxu0 %v88_v22 }
  0x24   :  { %2374 = vmatpush3.msra.mxu0 %v88_v22 }
  0x25   :  { %2375 = vmatprep.subr.mxu0 %v87_v23 }
  0x26   :  { %2376 = vmatpush3.msra.mxu0 %v87_v23 }
  0x27   :  { %2383 = vmatprep.subr.msk.mxu0 %vm102_vm0, %v540_v55 }
  0xd0   :  { %v2333_v24 = vpop.f32.mrf.mxu0 }
  0xd2   :  { %v172_v25 = vpop.f32.mrf.mxu0 }
  0xd3   :  { %2570 = vtanh.f32 %v172_v25 }
  0xd4   :  { %2572 = vtanh.f32 %v2333_v24  ;;  %v2357_v26 = vpop.f32.mrf.mxu0 }
  0xd5   :  { %2574 = vtanh.f32 %v2357_v26 }
  0xd6   :  { %v348_v27 = vpop.f32.mrf.mxu0 }
  0xd7   :  { %2576 = vtanh.f32 %v348_v27 }
  0xd8   :  { %v2360_v28 = vpop.f32.mrf.mxu0 }
  0xd9   :  { %2578 = vtanh.f32 %v2360_v28  ;;  %v548_v28 = vld [vmem:[%s3495_s13 + $0x38] sm:$0xff] }
  0xda   :  { %v358_v29 = vpop.f32.mrf.mxu0  ;;  %2388 = vmatprep.subr.mxu1 %v548_v28 }
  0xdb   :  { %2580 = vtanh.f32 %v358_v29  ;;  %v547_v29 = vld [vmem:[%s3495_s13 + $0x30] sm:$0xff] }
  0xe0   :  { %v2571_v30 = vpop.eup %2570 }
  0xe1   :  { %v2573_v31 = vpop.eup %2572  ;;  %2350 = vmatprep.mubr.msk.f32.mxu1 %vm183_vm4, %v2571_v30  ;;  %v546_v30 = vld [vmem:[%s3495_s13 + $0x28] sm:$0xff] }
  0xe2   :  { %2351 = vmatmul.mubr.msk.f32.vlgmr.msra.gmra.mxu1 %vm183_vm4, %v2573_v31  ;;  %v2575_v32 = vpop.eup %2574  ;;  %v557_v31 = vld [vmem:[%s3497_s15 + $0x38] sm:$0xff] }
  0xe3   :  { %2389 = vmatpush3.msra.mxu1 %v548_v28 }
  0xe4   :  { %v2577_v33 = vpop.eup %2576  ;;  %2390 = vmatprep.subr.mxu1 %v547_v29 }
  0xe5   :  { %2377 = vmatprep.mubr.msk.f32.mxu0 %vm183_vm4, %v2577_v33  ;;  %2391 = vmatpush3.msra.mxu1 %v547_v29  ;;  %v556_v33 = vld [vmem:[%s3497_s15 + $0x30] sm:$0xff] }
  0xe6   :  { %2378 = vmatmul.mubr.msk.f32.vlgmr.msra.gmra.mxu0 %vm183_vm4, %v2575_v32  ;;  %v2579_v34 = vpop.eup %2578  ;;  %2392 = vmatprep.subr.mxu1 %v546_v30  ;;  %v545_v32 = vld [vmem:[%s3495_s13 + $0x20] sm:$0xff] }
  0xe7   :  { %2384 = vmatpush3.msk.msra.mxu0 %vm102_vm0, %v540_v55  ;;  %2393 = vmatpush3.msra.mxu1 %v546_v30 }
  0xe8   :  { %v2581_v35 = vpop.eup %2580  ;;  %2407 = vmatprep.subr.msk.mxu0 %vm278_vm2, %v549_v61  ;;  %2394 = vmatprep.subr.mxu1 %v545_v32 }
  0xe9   :  { %2380 = vmatprep.mubr.msk.f32.mxu0 %vm183_vm4, %v2581_v35  ;;  %2395 = vmatpush3.msra.mxu1 %v545_v32  ;;  %v555_v35 = vld [vmem:[%s3497_s15 + $0x28] sm:$0xff] }
  0xea   :  { %2381 = vmatmul.mubr.msk.f32.gmra.mxu0 %vm183_vm4, %v2579_v34  ;;  %v544_v34 = vld [vmem:[%s3495_s13 + $0x18] sm:$0xff] }
  0xeb   :  { %2396 = vmatprep.subr.mxu1 %v544_v34 }
  0xec   :  { %2397 = vmatpush3.msra.mxu1 %v544_v34 }
 0x1a2   :  { %v2352_v36 = vpop.f32.mrf.mxu1 }
 0x1a3   :  { %v470_v37 = vmul.f32 1.442695, %v2352_v36  ;;  %v499_v3 = vsub.f32 %v2869_v2, %v2352_v36  ;;  %v543_v36 = vld [vmem:[%s3495_s13 + $0x10] sm:$0xff] }
 0x1a4   :  { %v256_v38 = vpop.f32.mrf.mxu1  ;;  %2398 = vmatprep.subr.mxu1 %v543_v36 }
 0x1a5   :  { %v468_v39 = vmul.f32 1.442695, %v256_v38  ;;  %v498_v62 = vsub.f32 %v2864_v1, %v256_v38  ;;  %v542_v38 = vld [vmem:[%s3495_s13 + $0x8] sm:$0xff]  ;;  %2399 = vmatpush3.msra.mxu1 %v543_v36 }
 0x1a6   :  { %v2964_v40 = vpop.f32.mrf.mxu0  ;;  %2400 = vmatprep.subr.mxu1 %v542_v38 }
 0x1a7   :  { %2582 = vpow2.f32 %v468_v39  ;;  %v474_v41 = vmul.f32 1.442695, %v2964_v40  ;;  %v513_v13 = vsub.f32 %v2892_v5, %v2964_v40  ;;  %v553_v39 = vld [vmem:[%s3497_s15 + $0x18] sm:$0xff]  ;;  %v541_v40 = vld [vmem:[%s3495_s13] sm:$0xff]  ;;  %2401 = vmatpush3.msra.mxu1 %v542_v38 }
 0x1a8   :  { %2584 = vpow2.f32 %v470_v37  ;;  %v449_v42 = vpop.f32.mrf.mxu0  ;;  %v554_v37 = vld [vmem:[%s3497_s15 + $0x20] sm:$0xff]  ;;  %2402 = vmatprep.subr.mxu1 %v541_v40 }
 0x1a9   :  { %v472_v43 = vmul.f32 1.442695, %v449_v42  ;;  %2586 = vpow2.f32 %v474_v41  ;;  %v512_v8 = vsub.f32 %v2880_v4, %v449_v42  ;;  %v552_v41 = vld [vmem:[%s3497_s15 + $0x10] sm:$0xff]  ;;  %2403 = vmatpush3.msra.mxu1 %v541_v40  ;;  %v551_v42 = vld [vmem:[%s3497_s15 + $0x8] sm:$0xff] }
 0x1aa   :  { %v2967_v44 = vpop.f32.mrf.mxu0 }
 0x1ab   :  { %2588 = vpow2.f32 %v472_v43  ;;  %v478_v45 = vmul.f32 1.442695, %v2967_v44  ;;  %v515_v19 = vsub.f32 %v2906_v7, %v2967_v44  ;;  %v550_v43 = vld [vmem:[%s3497_s15] sm:$0xff] }
 0x1ac   :  { %v459_v46 = vpop.f32.mrf.mxu0 }
 0x1ad   :  { %v476_v47 = vmul.f32 1.442695, %v459_v46  ;;  %2590 = vpow2.f32 %v478_v45  ;;  %v514_v14 = vsub.f32 %v2897_v6, %v459_v46 }
 0x1af   :  { %2592 = vpow2.f32 %v476_v47 }
 0x1b4   :  { %v2970_v48 = vpop.eup %2582 }
 0x1b5   :  { %v2972_v49 = vpop.eup %2584  ;;  %2594 = vrcp.f32 %v2970_v48 }
 0x1b6   :  { %v2975_v50 = vpop.eup %2586  ;;  %2596 = vrcp.f32 %v2972_v49 }
 0x1b8   :  { %v2977_v51 = vpop.eup %2588 }
 0x1b9   :  { %2598 = vrcp.f32 %v2977_v51 }
 0x1ba   :  { %v2981_v52 = vpop.eup %2590  ;;  %2600 = vrcp.f32 %v2975_v50 }
 0x1bc   :  { %v2984_v53 = vpop.eup %2592 }
 0x1bd   :  { %2602 = vrcp.f32 %v2984_v53 }
 0x1be   :  { %2604 = vrcp.f32 %v2981_v52 }
 0x1c2   :  { %v2595_v54 = vpop.eup %2594 }
 0x1c3   :  { %504 = vrot.lane.b32.xlu0 %v2595_v54, %s2736_s17  ;;  %v2597_v56 = vpop.eup %2596 }
 0x1c6   :  { %v2599_v57 = vpop.eup %2598 }
 0x1c7   :  { %524 = vrot.lane.b32.xlu1 %v2599_v57, %s2737_s3  ;;  %506 = vrot.lane.b32.xlu0 %v2597_v56, %s2736_s17  ;;  %v2601_v58 = vpop.eup %2600 }
 0x1ca   :  { %v2603_v59 = vpop.eup %2602 }
 0x1cb   :  { %526 = vrot.lane.b32.xlu1 %v2601_v58, %s2737_s3  ;;  %528 = vrot.lane.b32.xlu0 %v2603_v59, %s2737_s3  ;;  %v2605_v60 = vpop.eup %2604 }
 0x1cf   :  { %530 = vrot.lane.b32.xlu1 %v2605_v60, %s2737_s3 }
 0x235   :  { %v505_v63 = vpop.permute.xlu0 %504 }
 0x236   :  { %v3004_v0 = vmul.f32 %v505_v63, %v498_v62  ;;  %v1010_v62 = vld [vmem:[%s3490_s8] sm:$0xf] }
 0x237   :  { %2437 = vmatprep.subr.msk.mxu1 %vm102_vm0, %v1010_v62  ;;  %v1019_v63 = vld [vmem:[%s3492_s10] sm:$0x3] }
 0x238   :  { %560 = vrot.lane.b32.xlu0 %v3004_v0, %s2738_s29 }
 0x239   :  { %v525_v9 = vpop.permute.xlu1 %524  ;;  %v507_v10 = vpop.permute.xlu0 %506 }
 0x23a   :  { %v3010_v11 = vmul.f32 %v525_v9, %v512_v8  ;;  %v3012_v12 = vmul.f32 %v507_v10, %v499_v3 }
 0x23c   :  { %733 = vrot.lane.b32.xlu0 %v3010_v11, %s2739_s14  ;;  %562 = vrot.lane.b32.xlu1 %v3012_v12, %s2738_s29 }
 0x23d   :  { %v527_v15 = vpop.permute.xlu1 %526  ;;  %v529_v16 = vpop.permute.xlu0 %528 }
 0x23e   :  { %v3021_v17 = vmul.f32 %v527_v15, %v513_v13  ;;  %v3023_v18 = vmul.f32 %v529_v16, %v514_v14 }
 0x240   :  { %735 = vrot.lane.b32.xlu1 %v3021_v17, %s2739_s14  ;;  %737 = vrot.lane.b32.xlu0 %v3023_v18, %s2739_s14 }
 0x241   :  { %v531_v20 = vpop.permute.xlu1 %530 }
 0x242   :  { %v3031_v21 = vmul.f32 %v531_v20, %v515_v19 }
 0x244   :  { %739 = vrot.lane.b32.xlu1 %v3031_v21, %s2739_s14 }
 0x2aa   :  { %v561_v22 = vpop.permute.xlu0 %560 }
 0x2ab   :  { %2385 = vmatprep.mubr.msk.f32.mxu0 %vm95_vm1, %v561_v22 }
 0x2ae   :  { %v563_v23 = vpop.permute.xlu1 %562  ;;  %v734_v24 = vpop.permute.xlu0 %733 }
 0x2af   :  { %2386 = vmatmul.mubr.msk.f32.vlgmr.msra.gmra.mxu0 %vm95_vm1, %v563_v23 }
 0x2b0   :  { %2409 = vmatprep.mubr.msk.f32.mxu0 %vm265_vm3, %v734_v24  ;;  %2408 = vmatpush3.msk.msra.mxu0 %vm278_vm2, %v549_v61 }
 0x2b1   :  { %2415 = vmatprep.subr.mxu0 %v557_v31 }
 0x2b2   :  { %v736_v25 = vpop.permute.xlu1 %735  ;;  %v738_v26 = vpop.permute.xlu0 %737 }
 0x2b3   :  { %2410 = vmatmul.mubr.msk.f32.vlgmr.msra.gmra.mxu0 %vm265_vm3, %v736_v25 }
 0x2b4   :  { %2412 = vmatprep.mubr.msk.f32.mxu0 %vm265_vm3, %v738_v26  ;;  %2416 = vmatpush3.msra.mxu0 %v557_v31 }
 0x2b5   :  { %2417 = vmatprep.subr.mxu0 %v556_v33 }
 0x2b6   :  { %v740_v27 = vpop.permute.xlu1 %739  ;;  %2418 = vmatpush3.msra.mxu0 %v556_v33 }
 0x2b7   :  { %2413 = vmatmul.mubr.msk.f32.gmra.mxu0 %vm265_vm3, %v740_v27  ;;  %2419 = vmatprep.subr.mxu0 %v555_v35 }
 0x2b8   :  { %2420 = vmatpush3.msra.mxu0 %v555_v35 }
 0x2b9   :  { %2421 = vmatprep.subr.mxu0 %v554_v37 }
 0x2ba   :  { %2422 = vmatpush3.msra.mxu0 %v554_v37 }
 0x2bb   :  { %2423 = vmatprep.subr.mxu0 %v553_v39 }
 0x2bc   :  { %2424 = vmatpush3.msra.mxu0 %v553_v39 }
 0x2bd   :  { %2425 = vmatprep.subr.mxu0 %v552_v41 }
 0x2be   :  { %2426 = vmatpush3.msra.mxu0 %v552_v41 }
 0x2bf   :  { %2427 = vmatprep.subr.mxu0 %v551_v42 }
 0x2c0   :  { %2428 = vmatpush3.msra.mxu0 %v551_v42 }
 0x2c1   :  { %2429 = vmatprep.subr.mxu0 %v550_v43 }
 0x2c2   :  { %2430 = vmatpush3.msra.mxu0 %v550_v43 }
 0x2c3   :  { %2461 = vmatprep.subr.msk.mxu0 %vm278_vm2, %v1019_v63 }
 0x36f   :  { %v2387_v44 = vpop.f32.mrf.mxu0 }
 0x371   :  { %v637_v45 = vpop.f32.mrf.mxu0 }
 0x372   :  { %2606 = vtanh.f32 %v637_v45 }
 0x373   :  { %2608 = vtanh.f32 %v2387_v44  ;;  %v2411_v46 = vpop.f32.mrf.mxu0 }
 0x375   :  { %v818_v47 = vpop.f32.mrf.mxu0 }
 0x376   :  { %2610 = vtanh.f32 %v818_v47 }
 0x377   :  { %2612 = vtanh.f32 %v2411_v46  ;;  %v2414_v54 = vpop.f32.mrf.mxu0 }
 0x379   :  { %v828_v55 = vpop.f32.mrf.mxu0 }
 0x37a   :  { %2614 = vtanh.f32 %v828_v55 }
 0x37b   :  { %2616 = vtanh.f32 %v2414_v54 }
 0x37f   :  { %v2607_v56 = vpop.eup %2606 }
 0x380   :  { %v2609_v57 = vpop.eup %2608  ;;  %2404 = vmatprep.mubr.msk.f32.mxu1 %vm183_vm4, %v2607_v56  ;;  %v1016_v56 = vld [vmem:[%s3491_s9 + $0x28] sm:$0xff] }
 0x381   :  { %2405 = vmatmul.mubr.msk.f32.vlgmr.msra.gmra.mxu1 %vm183_vm4, %v2609_v57  ;;  %v1027_v57 = vld [vmem:[%s3493_s11 + $0x38] sm:$0xff] }
 0x382   :  { %2438 = vmatpush3.msk.msra.mxu1 %vm102_vm0, %v1010_v62  ;;  %v1013_v62 = vld [vmem:[%s3491_s9 + $0x10] sm:$0xff] }
 0x383   :  { %v2611_v58 = vpop.eup %2610 }
 0x384   :  { %v2613_v59 = vpop.eup %2612  ;;  %2431 = vmatprep.mubr.msk.f32.mxu0 %vm183_vm4, %v2611_v58  ;;  %v1015_v58 = vld [vmem:[%s3491_s9 + $0x20] sm:$0xff] }
 0x385   :  { %2432 = vmatmul.mubr.msk.f32.vlgmr.msra.gmra.mxu0 %vm183_vm4, %v2613_v59  ;;  %v1026_v59 = vld [vmem:[%s3493_s11 + $0x30] sm:$0xff] }
 0x386   :  { %2462 = vmatpush3.msk.msra.mxu0 %vm278_vm2, %v1019_v63  ;;  %v1024_v63 = vld [vmem:[%s3493_s11 + $0x20] sm:$0xff] }
 0x387   :  { %v2615_v60 = vpop.eup %2614  ;;  %2469 = vmatprep.subr.mxu0 %v1027_v57 }
 0x388   :  { %v2617_v61 = vpop.eup %2616  ;;  %2434 = vmatprep.mubr.msk.f32.mxu0 %vm183_vm4, %v2615_v60  ;;  %v1014_v60 = vld [vmem:[%s3491_s9 + $0x18] sm:$0xff] }
 0x389   :  { %2435 = vmatmul.mubr.msk.f32.gmra.mxu0 %vm183_vm4, %v2617_v61  ;;  %v1025_v61 = vld [vmem:[%s3493_s11 + $0x28] sm:$0xff] }
 0x441   :  { %v2406_v3 = vpop.f32.mrf.mxu1 }
 0x442   :  { %972 = vrot.lane.b32.xlu1 %v2406_v3, %s2738_s29  ;;  %v940_v16 = vmul.f32 1.442695, %v2406_v3  ;;  %v1012_v3 = vld [vmem:[%s3491_s9 + $0x8] sm:$0xff] }
 0x443   :  { %v720_v8 = vpop.f32.mrf.mxu1 }
 0x444   :  { %970 = vrot.lane.b32.xlu0 %v720_v8, %s2738_s29  ;;  %v938_v15 = vmul.f32 1.442695, %v720_v8  ;;  %v1023_v8 = vld [vmem:[%s3493_s11 + $0x18] sm:$0xff] }
 0x445   :  { %v2433_v9 = vpop.f32.mrf.mxu0 }
 0x446   :  { %988 = vrot.lane.b32.xlu1 %v2433_v9, %s2739_s14  ;;  %2618 = vpow2.f32 %v938_v15  ;;  %v944_v20 = vmul.f32 1.442695, %v2433_v9  ;;  %v1011_v9 = vld [vmem:[%s3491_s9] sm:$0xff] }
 0x447   :  { %v919_v10 = vpop.f32.mrf.mxu0  ;;  %2620 = vpow2.f32 %v940_v16 }
 0x448   :  { %986 = vrot.lane.b32.xlu0 %v919_v10, %s2739_s14  ;;  %v942_v19 = vmul.f32 1.442695, %v919_v10  ;;  %v1022_v10 = vld [vmem:[%s3493_s11 + $0x10] sm:$0xff] }
 0x449   :  { %v2436_v13 = vpop.f32.mrf.mxu0 }
 0x44a   :  { %992 = vrot.lane.b32.xlu1 %v2436_v13, %s2739_s14  ;;  %2622 = vpow2.f32 %v942_v19  ;;  %v948_v23 = vmul.f32 1.442695, %v2436_v13  ;;  %v1021_v13 = vld [vmem:[%s3493_s11 + $0x8] sm:$0xff] }
 0x44b   :  { %v929_v14 = vpop.f32.mrf.mxu0  ;;  %2624 = vpow2.f32 %v944_v20 }
 0x44c   :  { %990 = vrot.lane.b32.xlu0 %v929_v14, %s2739_s14  ;;  %v946_v22 = vmul.f32 1.442695, %v929_v14  ;;  %v1020_v14 = vld [vmem:[%s3493_s11] sm:$0xff] }
 0x44e   :  { %2626 = vpow2.f32 %v946_v22 }
 0x44f   :  { %2628 = vpow2.f32 %v948_v23 }
 0x453   :  { %v3112_v24 = vpop.eup %2618 }
 0x454   :  { %v3114_v25 = vpop.eup %2620  ;;  %2630 = vrcp.f32 %v3112_v24 }
 0x455   :  { %2632 = vrcp.f32 %v3114_v25 }
 0x457   :  { %v3117_v26 = vpop.eup %2622 }
 0x458   :  { %v3120_v27 = vpop.eup %2624  ;;  %2634 = vrcp.f32 %v3117_v26 }
 0x459   :  { %2636 = vrcp.f32 %v3120_v27 }
 0x45b   :  { %v3123_v28 = vpop.eup %2626 }
 0x45c   :  { %v3126_v29 = vpop.eup %2628  ;;  %2638 = vrcp.f32 %v3123_v28 }
 0x45d   :  { %2640 = vrcp.f32 %v3126_v29 }
 0x461   :  { %v2631_v34 = vpop.eup %2630 }
 0x462   :  { %v2633_v36 = vpop.eup %2632 }
 0x465   :  { %v2635_v42 = vpop.eup %2634 }
 0x4b4   :  { %v973_v30 = vpop.permute.xlu1 %972 }
 0x4b5   :  { %v977_v31 = vsub.f32 %v2869_v2, %v973_v30 }
 0x4b6   :  { %v971_v32 = vpop.permute.xlu0 %970 }
 0x4b7   :  { %v976_v33 = vsub.f32 %v2864_v1, %v971_v32  ;;  %v3134_v38 = vmul.f32 %v2633_v36, %v977_v31  ;;  %v2637_v1 = vpop.eup %2636 }
 0x4b8   :  { %v989_v35 = vpop.permute.xlu1 %988 }
 0x4b9   :  { %v3132_v37 = vmul.f32 %v2631_v34, %v976_v33  ;;  %v999_v39 = vsub.f32 %v2892_v5, %v989_v35 }
 0x4ba   :  { %v987_v40 = vpop.permute.xlu0 %986 }
 0x4bb   :  { %v998_v41 = vsub.f32 %v2880_v4, %v987_v40  ;;  %2439 = vmatprep.mubr.msk.f32.mxu1 %vm95_vm1, %v3132_v37  ;;  %v3144_v44 = vmul.f32 %v2637_v1, %v999_v39  ;;  %v2639_v4 = vpop.eup %2638 }
 0x4bc   :  { %v993_v2 = vpop.permute.xlu1 %992  ;;  %2440 = vmatmul.mubr.msk.f32.vlgmr.msra.gmra.mxu1 %vm95_vm1, %v3134_v38  ;;  %v2641_v47 = vpop.eup %2640 }
 0x4bd   :  { %v3142_v43 = vmul.f32 %v2635_v42, %v998_v41  ;;  %v1001_v45 = vsub.f32 %v2906_v7, %v993_v2  ;;  %v1017_v7 = vld [vmem:[%s3491_s9 + $0x30] sm:$0xff] }
 0x4be   :  { %v991_v46 = vpop.permute.xlu0 %990 }
 0x4bf   :  { %v1000_v5 = vsub.f32 %v2897_v6, %v991_v46  ;;  %2463 = vmatprep.mubr.msk.f32.mxu0 %vm265_vm3, %v3142_v43  ;;  %v3154_v55 = vmul.f32 %v2641_v47, %v1001_v45  ;;  %v1018_v6 = vld [vmem:[%s3491_s9 + $0x38] sm:$0xff] }
 0x4c0   :  { %2464 = vmatmul.mubr.msk.f32.vlgmr.msra.gmra.mxu0 %vm265_vm3, %v3144_v44  ;;  %2442 = vmatprep.subr.mxu1 %v1018_v6 }
 0x4c1   :  { %v3152_v54 = vmul.f32 %v2639_v4, %v1000_v5  ;;  %2443 = vmatpush3.msra.mxu1 %v1018_v6  ;;  %2470 = vmatpush3.msra.mxu0 %v1027_v57 }
 0x4c2   :  { %2444 = vmatprep.subr.mxu1 %v1017_v7  ;;  %2471 = vmatprep.subr.mxu0 %v1026_v59 }
 0x4c3   :  { %2466 = vmatprep.mubr.msk.f32.mxu0 %vm265_vm3, %v3152_v54  ;;  %2445 = vmatpush3.msra.mxu1 %v1017_v7 }
 0x4c4   :  { %2467 = vmatmul.mubr.msk.f32.gmra.mxu0 %vm265_vm3, %v3154_v55  ;;  %2446 = vmatprep.subr.mxu1 %v1016_v56 }
 0x4c5   :  { %2447 = vmatpush3.msra.mxu1 %v1016_v56  ;;  %2472 = vmatpush3.msra.mxu0 %v1026_v59 }
 0x4c6   :  { %2448 = vmatprep.subr.mxu1 %v1015_v58  ;;  %2473 = vmatprep.subr.mxu0 %v1025_v61 }
 0x4c7   :  { %2449 = vmatpush3.msra.mxu1 %v1015_v58  ;;  %2474 = vmatpush3.msra.mxu0 %v1025_v61 }
 0x4c8   :  { %2450 = vmatprep.subr.mxu1 %v1014_v60  ;;  %2475 = vmatprep.subr.mxu0 %v1024_v63 }
 0x4c9   :  { %2451 = vmatpush3.msra.mxu1 %v1014_v60  ;;  %2476 = vmatpush3.msra.mxu0 %v1024_v63 }
 0x4ca   :  { %2452 = vmatprep.subr.mxu1 %v1013_v62  ;;  %2477 = vmatprep.subr.mxu0 %v1023_v8 }
 0x4cb   :  { %2453 = vmatpush3.msra.mxu1 %v1013_v62  ;;  %2478 = vmatpush3.msra.mxu0 %v1023_v8 }
 0x4cc   :  { %2454 = vmatprep.subr.mxu1 %v1012_v3  ;;  %2479 = vmatprep.subr.mxu0 %v1022_v10 }
 0x4cd   :  { %2455 = vmatpush3.msra.mxu1 %v1012_v3  ;;  %2480 = vmatpush3.msra.mxu0 %v1022_v10  ;;  %v1477_v10 = vld [vmem:[%s3518_s26] sm:$0x3]  ;;  %s2131_s26 = sshll.u32 %s2742_s25, 4  ;;  %s2132_s26 = int_to_ptr.vmem [resolvable:$true] %s2131_s26 }
 0x4ce   :  { %2456 = vmatprep.subr.mxu1 %v1011_v9  ;;  %2481 = vmatprep.subr.mxu0 %v1021_v13  ;;  %p2719_p1 = scmp.lt.s32.totalorder %s2132_s26, %s2132_s26 }
 0x4cf   :  { %2457 = vmatpush3.msra.mxu1 %v1011_v9  ;;  %2482 = vmatpush3.msra.mxu0 %v1021_v13  ;;  %v1468_v9 = vld [vmem:[%s3517_s18] sm:$0xf] }
 0x4d0   :  { %2483 = vmatprep.subr.mxu0 %v1020_v14  ;;  %2491 = vmatprep.subr.msk.mxu1 %vm102_vm0, %v1468_v9 }
 0x4d1   :  { %2484 = vmatpush3.msra.mxu0 %v1020_v14 }
 0x4d2   :  { %2515 = vmatprep.subr.msk.mxu0 %vm278_vm2, %v1477_v10 }
 0x57c   :  { %v2441_v15 = vpop.f32.mrf.mxu1 }
 0x57e   :  { %v1103_v16 = vpop.f32.mrf.mxu1 }
 0x57f   :  { %2642 = vtanh.f32 %v1103_v16 }
 0x580   :  { %2644 = vtanh.f32 %v2441_v15  ;;  %v2465_v19 = vpop.f32.mrf.mxu0 }
 0x582   :  { %v1276_v20 = vpop.f32.mrf.mxu0 }
 0x583   :  { %2646 = vtanh.f32 %v1276_v20 }
 0x584   :  { %2648 = vtanh.f32 %v2465_v19  ;;  %v2468_v22 = vpop.f32.mrf.mxu0 }
 0x586   :  { %v1286_v23 = vpop.f32.mrf.mxu0 }
 0x587   :  { %2650 = vtanh.f32 %v1286_v23 }
 0x588   :  { %2652 = vtanh.f32 %v2468_v22 }
 0x58c   :  { %v2643_v30 = vpop.eup %2642 }
 0x58d   :  { %v2645_v31 = vpop.eup %2644  ;;  %2458 = vmatprep.mubr.msk.f32.mxu1 %vm183_vm4, %v2643_v30 }
 0x58e   :  { %2459 = vmatmul.mubr.msk.f32.vlgmr.msra.gmra.mxu1 %vm183_vm4, %v2645_v31 }
 0x58f   :  { %2492 = vmatpush3.msk.msra.mxu1 %vm102_vm0, %v1468_v9 }
 0x590   :  { %v2647_v32 = vpop.eup %2646 }
 0x591   :  { %v2649_v33 = vpop.eup %2648  ;;  %2485 = vmatprep.mubr.msk.f32.mxu0 %vm183_vm4, %v2647_v32 }
 0x592   :  { %2486 = vmatmul.mubr.msk.f32.vlgmr.msra.gmra.mxu0 %vm183_vm4, %v2649_v33 }
 0x593   :  { %2516 = vmatpush3.msk.msra.mxu0 %vm278_vm2, %v1477_v10  ;;  %v1470_v10 = vld [vmem:[%s3519_s19 + $0x8] sm:$0xff] }
 0x594   :  { %v2651_v34 = vpop.eup %2650 }
 0x595   :  { %v2653_v35 = vpop.eup %2652  ;;  %2488 = vmatprep.mubr.msk.f32.mxu0 %vm183_vm4, %v2651_v34 }
 0x596   :  { %2489 = vmatmul.mubr.msk.f32.gmra.mxu0 %vm183_vm4, %v2653_v35 }
 0x64e   :  { %v2460_v36 = vpop.f32.mrf.mxu1 }
 0x64f   :  { %v1398_v39 = vmul.f32 1.442695, %v2460_v36  ;;  %v1427_v13 = vsub.f32 %v3012_v12, %v2460_v36 }
 0x650   :  { %v1186_v40 = vpop.f32.mrf.mxu1 }
 0x651   :  { %2654 = vpow2.f32 %v1398_v39  ;;  %v1396_v41 = vmul.f32 1.442695, %v1186_v40  ;;  %v1426_v15 = vsub.f32 %v3004_v0, %v1186_v40  ;;  %v962_v39 = vsel %vm265_vm3, %v3123_v28, 0.0 }
 0x652   :  { %v2487_v42 = vpop.f32.mrf.mxu0  ;;  %v492_v40 = vsel %vm265_vm3, %v2984_v53, 0.0  ;;  %v483_v53 = vsel %vm95_vm1, %v2972_v49, 0.0 }
 0x653   :  { %2656 = vpow2.f32 %v1396_v41  ;;  %v1402_v2 = vmul.f32 1.442695, %v2487_v42  ;;  %v1441_v20 = vsub.f32 %v3021_v17, %v2487_v42  ;;  %v486_v42 = vsel %vm265_vm3, %v2977_v51, 0.0 }
 0x654   :  { %v1377_v1 = vpop.f32.mrf.mxu0 }
 0x655   :  { %2658 = vpow2.f32 %v1402_v2  ;;  %v1400_v45 = vmul.f32 1.442695, %v1377_v1  ;;  %v1440_v30 = vsub.f32 %v3010_v11, %v1377_v1  ;;  %v953_v2 = vsel %vm95_vm1, %v3114_v25, 0.0 }
 0x656   :  { %v2490_v46 = vpop.f32.mrf.mxu0 }
 0x657   :  { %2660 = vpow2.f32 %v1400_v45  ;;  %v1406_v5 = vmul.f32 1.442695, %v2490_v46  ;;  %v1443_v0 = vsub.f32 %v3031_v21, %v2490_v46  ;;  %v495_v21 = vsel %vm265_vm3, %v2981_v52, 0.0 }
 0x658   :  { %v1387_v4 = vpop.f32.mrf.mxu0  ;;  %v489_v52 = vsel %vm265_vm3, %v2975_v50, 0.0  ;;  %v956_v50 = vsel %vm265_vm3, %v3117_v26, 0.0  ;;  %v950_v26 = vsel %vm95_vm1, %v3112_v24, 0.0 }
 0x659   :  { %2662 = vpow2.f32 %v1406_v5  ;;  %v1404_v47 = vmul.f32 1.442695, %v1387_v4  ;;  %v1442_v33 = vsub.f32 %v3023_v18, %v1387_v4  ;;  %v965_v18 = vsel %vm265_vm3, %v3126_v29, 0.0 }
 0x65a   :  { %v959_v29 = vsel %vm265_vm3, %v3120_v27, 0.0  ;;  %v480_v27 = vsel %vm95_vm1, %v2970_v48, 0.0 }
 0x65b   :  { %2664 = vpow2.f32 %v1404_v47 }
 0x65e   :  { %v3214_v6 = vpop.eup %2654 }
 0x65f   :  { %2666 = vrcp.f32 %v3214_v6  ;;  %v1411_v49 = vsel %vm95_vm1, %v3214_v6, 0.0 }
 0x660   :  { %v3217_v7 = vpop.eup %2656 }
 0x661   :  { %2668 = vrcp.f32 %v3217_v7  ;;  %v1408_v48 = vsel %vm95_vm1, %v3217_v7, 0.0  ;;  %v1476_v7 = vld [vmem:[%s3519_s19 + $0x38] sm:$0xff] }
 0x662   :  { %v3220_v56 = vpop.eup %2658  ;;  %2496 = vmatprep.subr.mxu1 %v1476_v7 }
 0x663   :  { %2670 = vrcp.f32 %v3220_v56  ;;  %v1417_v28 = vsel %vm265_vm3, %v3220_v56, 0.0  ;;  %v1475_v56 = vld [vmem:[%s3519_s19 + $0x30] sm:$0xff] }
 0x664   :  { %v3223_v57 = vpop.eup %2660 }
 0x665   :  { %2672 = vrcp.f32 %v3223_v57  ;;  %v1414_v51 = vsel %vm265_vm3, %v3223_v57, 0.0 }
 0x666   :  { %v2663_v58 = vpop.eup %2662 }
 0x667   :  { %2674 = vrcp.f32 %v2663_v58  ;;  %v1423_v36 = vsel %vm265_vm3, %v2663_v58, 0.0 }
 0x668   :  { %v2665_v59 = vpop.eup %2664 }
 0x669   :  { %2676 = vrcp.f32 %v2665_v59  ;;  %v1420_v41 = vsel %vm265_vm3, %v2665_v59, 0.0  ;;  %v1474_v59 = vld [vmem:[%s3519_s19 + $0x28] sm:$0xff] }
 0x66c   :  { %v2667_v60 = vpop.eup %2666 }
 0x66d   :  { %1434 = vrot.lane.b32.xlu1 %v2667_v60, %s2736_s17  ;;  %v1473_v60 = vld [vmem:[%s3519_s19 + $0x20] sm:$0xff] }
 0x66e   :  { %v2669_v61 = vpop.eup %2668 }
 0x66f   :  { %1432 = vrot.lane.b32.xlu0 %v2669_v61, %s2736_s17 }
 0x670   :  { %v2671_v62 = vpop.eup %2670 }
 0x671   :  { %1454 = vrot.lane.b32.xlu1 %v2671_v62, %s2737_s3 }
 0x672   :  { %v2673_v63 = vpop.eup %2672 }
 0x673   :  { %1452 = vrot.lane.b32.xlu0 %v2673_v63, %s2737_s3 }
 0x674   :  { %v2675_v3 = vpop.eup %2674 }
 0x675   :  { %1458 = vrot.lane.b32.xlu1 %v2675_v3, %s2737_s3  ;;  %v1472_v3 = vld [vmem:[%s3519_s19 + $0x18] sm:$0xff] }
 0x676   :  { %v2677_v8 = vpop.eup %2676 }
 0x677   :  { %1456 = vrot.lane.b32.xlu0 %v2677_v8, %s2737_s3  ;;  %v1471_v8 = vld [vmem:[%s3519_s19 + $0x10] sm:$0xff] }
 0x6df   :  { %v1435_v14 = vpop.permute.xlu1 %1434 }
 0x6e0   :  { %v3244_v16 = vmul.f32 %v1435_v14, %v1427_v13  ;;  %v1469_v13 = vld [vmem:[%s3519_s19] sm:$0xff] }
 0x6e1   :  { %v1433_v19 = vpop.permute.xlu0 %1432 }
 0x6e2   :  { %v3247_v22 = vmul.f32 %v1433_v19, %v1426_v15  ;;  %1490 = vrot.lane.b32.xlu1 %v3244_v16, %s2738_s29 }
 0x6e3   :  { %v1455_v23 = vpop.permute.xlu1 %1454 }
 0x6e4   :  { %v3252_v31 = vmul.f32 %v1455_v23, %v1441_v20  ;;  %1488 = vrot.lane.b32.xlu0 %v3247_v22, %s2738_s29  ;;  %v1485_v23 = vld [vmem:[%s3489_s7 + $0x38] sm:$0xff] }
 0x6e5   :  { %v1453_v12 = vpop.permute.xlu0 %1452 }
 0x6e6   :  { %v3257_v32 = vmul.f32 %v1453_v12, %v1440_v30  ;;  %1663 = vrot.lane.b32.xlu1 %v3252_v31, %s2739_s14 }
 0x6e7   :  { %v1459_v17 = vpop.permute.xlu1 %1458 }
 0x6e8   :  { %v3262_v34 = vmul.f32 %v1459_v17, %v1443_v0  ;;  %1661 = vrot.lane.b32.xlu0 %v3257_v32, %s2739_s14 }
 0x6e9   :  { %v1457_v11 = vpop.permute.xlu0 %1456 }
 0x6ea   :  { %v3266_v35 = vmul.f32 %v1457_v11, %v1442_v33  ;;  %1667 = vrot.lane.b32.xlu1 %v3262_v34, %s2739_s14 }
 0x6ec   :  { %1665 = vrot.lane.b32.xlu0 %v3266_v35, %s2739_s14 }
 0x70b   :  { %496 = vadd.xlane.f32.xlu0 %v495_v21 }
 0x70e   :  { %966 = vadd.xlane.f32.xlu1 %v965_v18 }
 0x70f   :  { %1424 = vadd.xlane.f32.xlu0 %v1423_v36 }
 0x712   :  { %963 = vadd.xlane.f32.xlu1 %v962_v39 }
 0x713   :  { %493 = vadd.xlane.f32.xlu0 %v492_v40 }
 0x716   :  { %1421 = vadd.xlane.f32.xlu1 %v1420_v41 }
 0x717   :  { %490 = vadd.xlane.f32.xlu0 %v489_v52 }
 0x71a   :  { %960 = vadd.xlane.f32.xlu1 %v959_v29 }
 0x71b   :  { %487 = vadd.xlane.f32.xlu0 %v486_v42 }
 0x71e   :  { %1418 = vadd.xlane.f32.xlu1 %v1417_v28 }
 0x71f   :  { %484 = vadd.xlane.f32.xlu0 %v483_v53 }
 0x722   :  { %957 = vadd.xlane.f32.xlu1 %v956_v50  ;;  %v1484_v50 = vld [vmem:[%s3489_s7 + $0x30] sm:$0xff] }
 0x723   :  { %481 = vadd.xlane.f32.xlu0 %v480_v27 }
 0x726   :  { %1415 = vadd.xlane.f32.xlu1 %v1414_v51  ;;  %v1483_v51 = vld [vmem:[%s3489_s7 + $0x28] sm:$0xff] }
 0x72a   :  { %954 = vadd.xlane.f32.xlu1 %v953_v2 }
 0x72e   :  { %1412 = vadd.xlane.f32.xlu1 %v1411_v49  ;;  %v1482_v49 = vld [vmem:[%s3489_s7 + $0x20] sm:$0xff] }
 0x732   :  { %951 = vadd.xlane.f32.xlu1 %v950_v26  ;;  %v1481_v26 = vld [vmem:[%s3489_s7 + $0x18] sm:$0xff] }
 0x736   :  { %1409 = vadd.xlane.f32.xlu1 %v1408_v48  ;;  %v1480_v48 = vld [vmem:[%s3489_s7 + $0x10] sm:$0xff] }
 0x754   :  { %v1491_v1 = vpop.permute.xlu1 %1490 }
 0x756   :  { %v1489_v45 = vpop.permute.xlu0 %1488 }
 0x757   :  { %2493 = vmatprep.mubr.msk.f32.mxu1 %vm95_vm1, %v1489_v45  ;;  %v1478_v45 = vld [vmem:[%s3489_s7] sm:$0xff] }
 0x758   :  { %2494 = vmatmul.mubr.msk.f32.vlgmr.msra.gmra.mxu1 %vm95_vm1, %v1491_v1  ;;  %v1664_v25 = vpop.permute.xlu1 %1663  ;;  %v1479_v1 = vld [vmem:[%s3489_s7 + $0x8] sm:$0xff] }
 0x759   :  { %2497 = vmatpush3.msra.mxu1 %v1476_v7 }
 0x75a   :  { %v1662_v46 = vpop.permute.xlu0 %1661  ;;  %2498 = vmatprep.subr.mxu1 %v1475_v56 }
 0x75b   :  { %2517 = vmatprep.mubr.msk.f32.mxu0 %vm265_vm3, %v1662_v46  ;;  %2499 = vmatpush3.msra.mxu1 %v1475_v56 }
 0x75c   :  { %2518 = vmatmul.mubr.msk.f32.vlgmr.msra.gmra.mxu0 %vm265_vm3, %v1664_v25  ;;  %v1668_v4 = vpop.permute.xlu1 %1667  ;;  %2500 = vmatprep.subr.mxu1 %v1474_v59 }
 0x75d   :  { %2501 = vmatpush3.msra.mxu1 %v1474_v59 }
 0x75e   :  { %v1666_v5 = vpop.permute.xlu0 %1665  ;;  %2502 = vmatprep.subr.mxu1 %v1473_v60 }
 0x75f   :  { %2520 = vmatprep.mubr.msk.f32.mxu0 %vm265_vm3, %v1666_v5  ;;  %2503 = vmatpush3.msra.mxu1 %v1473_v60 }
 0x760   :  { %2521 = vmatmul.mubr.msk.f32.gmra.mxu0 %vm265_vm3, %v1668_v4  ;;  %2504 = vmatprep.subr.mxu1 %v1472_v3 }
 0x761   :  { %2505 = vmatpush3.msra.mxu1 %v1472_v3 }
 0x762   :  { %2506 = vmatprep.subr.mxu1 %v1471_v8 }
 0x763   :  { %2507 = vmatpush3.msra.mxu1 %v1471_v8 }
 0x764   :  { %2508 = vmatprep.subr.mxu1 %v1470_v10 }
 0x765   :  { %2509 = vmatpush3.msra.mxu1 %v1470_v10 }
 0x766   :  { %2510 = vmatprep.subr.mxu1 %v1469_v13 }
 0x767   :  { %2511 = vmatpush3.msra.mxu1 %v1469_v13 }
 0x768   :  { %2523 = vmatprep.subr.mxu1 %v1485_v23 }
 0x794   :  { %v3312_v24 = vpop.xlane.xlu0 %496 }
 0x797   :  { %v3314_v47 = vpop.xlane.xlu1 %966 }
 0x798   :  { %v3316_v6 = vpop.xlane.xlu0 %1424 }
 0x79b   :  { %v964_v57 = vpop.xlane.xlu1 %963 }
 0x79c   :  { %v494_v58 = vpop.xlane.xlu0 %493 }
 0x79d   :  { %v1948_v61 = vsel %vm1938_vm5, %v494_v58, %v964_v57 }
 0x79f   :  { %v1422_v62 = vpop.xlane.xlu1 %1421 }
 0x7a0   :  { %v3332_v63 = vsel %vm265_vm3, %v1948_v61, %v1422_v62  ;;  %v491_v14 = vpop.xlane.xlu0 %490 }
 0x7a3   :  { %v961_v9 = vpop.xlane.xlu1 %960 }
 0x7a4   :  { %v1947_v15 = vsel %vm1938_vm5, %v491_v14, %v961_v9  ;;  %v488_v12 = vpop.xlane.xlu0 %487 }
 0x7a7   :  { %v1419_v19 = vpop.xlane.xlu1 %1418 }
 0x7a8   :  { %v3348_v20 = vsel %vm265_vm3, %v1947_v15, %v1419_v19  ;;  %v485_v21 = vpop.xlane.xlu0 %484 }
 0x7ab   :  { %v958_v30 = vpop.xlane.xlu1 %957 }
 0x7ac   :  { %v1946_v0 = vsel %vm1938_vm5, %v488_v12, %v958_v30 }
 0x7af   :  { %v1416_v17 = vpop.xlane.xlu1 %1415 }
 0x7b0   :  { %v3355_v33 = vsel %vm265_vm3, %v1946_v0, %v1416_v17 }
 0x7b3   :  { %v955_v11 = vpop.xlane.xlu1 %954 }
 0x7b4   :  { %v1940_v18 = vsel %vm1938_vm5, %v485_v21, %v955_v11  ;;  %v2740_v21 = vmov 0.0  }
 0x7b5   :  { %2545 = vmatprep.subr.mxu0 %v2740_v21  ;;  %2553 = vmatprep.mubr.msk.f32.mxu0 %vm2741_vm6, %v2740_v21 }
 0x7b7   :  { %v1413_v36 = vpop.xlane.xlu1 %1412 }
 0x7b8   :  { %v3359_v39 = vsel %vm265_vm3, %v1940_v18, %v1413_v36 }
 0x7bb   :  { %v952_v36 = vpop.xlane.xlu1 %951 }
 0x818   :  { %v2495_v40 = vpop.f32.mrf.mxu1 }
 0x81a   :  { %v1565_v41 = vpop.f32.mrf.mxu1 }
 0x81b   :  { %2678 = vtanh.f32 %v1565_v41 }
 0x81c   :  { %2680 = vtanh.f32 %v2495_v40  ;;  %v2519_v52 = vpop.f32.mrf.mxu0  ;;  %v1410_v40 = vpop.xlane.xlu1 %1409 }
 0x81e   :  { %v1746_v29 = vpop.f32.mrf.mxu0 }
 0x81f   :  { %2682 = vtanh.f32 %v1746_v29 }
 0x820   :  { %v2522_v42 = vpop.f32.mrf.mxu0  ;;  %2684 = vtanh.f32 %v2519_v52 }
 0x822   :  { %v1756_v27 = vpop.f32.mrf.mxu0 }
 0x823   :  { %2686 = vtanh.f32 %v1756_v27 }
 0x824   :  { %2688 = vtanh.f32 %v2522_v42 }
 0x828   :  { %v2679_v28 = vpop.eup %2678 }
 0x829   :  { %v2681_v53 = vpop.eup %2680  ;;  %2512 = vmatprep.mubr.msk.f32.mxu1 %vm183_vm4, %v2679_v28 }
 0x82a   :  { %2513 = vmatmul.mubr.msk.f32.vlgmr.msra.gmra.mxu1 %vm183_vm4, %v2681_v53 }
 0x82b   :  { %2524 = vmatpush3.msra.mxu1 %v1485_v23 }
 0x82c   :  { %v2683_v2 = vpop.eup %2682  ;;  %2525 = vmatprep.subr.mxu1 %v1484_v50 }
 0x82d   :  { %2526 = vmatpush3.msra.mxu1 %v1484_v50  ;;  %2539 = vmatprep.mubr.msk.f32.mxu1 %vm183_vm4, %v2683_v2  ;;  %v2685_v25 = vpop.eup %2684 }
 0x82e   :  { %2527 = vmatprep.subr.mxu1 %v1483_v51 }
 0x82f   :  { %2528 = vmatpush3.msra.mxu1 %v1483_v51 }
 0x830   :  { %2529 = vmatprep.subr.mxu1 %v1482_v49  ;;  %v2687_v46 = vpop.eup %2686 }
 0x831   :  { %2530 = vmatpush3.msra.mxu1 %v1482_v49  ;;  %v2689_v5 = vpop.eup %2688 }
 0x832   :  { %2531 = vmatprep.subr.mxu1 %v1481_v26 }
 0x833   :  { %2532 = vmatpush3.msra.mxu1 %v1481_v26 }
 0x834   :  { %2533 = vmatprep.subr.mxu1 %v1480_v48 }
 0x835   :  { %2534 = vmatpush3.msra.mxu1 %v1480_v48 }
 0x836   :  { %2535 = vmatprep.subr.mxu1 %v1479_v1 }
 0x837   :  { %2536 = vmatpush3.msra.mxu1 %v1479_v1 }
 0x838   :  { %2537 = vmatprep.subr.mxu1 %v1478_v45 }
 0x839   :  { %2538 = vmatpush3.msra.mxu1 %v1478_v45 }
 0x83a   :  { %2540 = vmatmul.mubr.msk.f32.vlgmr.msra.gmra.mxu1 %vm183_vm4, %v2685_v25  ;;  %v482_v25 = vpop.xlane.xlu0 %481 }
 0x83b   :  { %2542 = vmatprep.mubr.msk.f32.mxu1 %vm183_vm4, %v2687_v46 }
 0x83e   :  { %2543 = vmatmul.mubr.msk.f32.gmra.mxu1 %vm183_vm4, %v2689_v5 }
 0x8ea   :  { %v2514_v4 = vpop.f32.mrf.mxu1 }
 0x8eb   :  { %v1868_v8 = vmul.f32 1.442695, %v2514_v4 }
 0x8ec   :  { %v1648_v7 = vpop.f32.mrf.mxu1 }
 0x8ed   :  { %1898 = vrot.lane.b32.xlu1 %v1648_v7, %s2738_s29  ;;  %v1866_v10 = vmul.f32 1.442695, %v1648_v7 }
 0x8fa   :  { %v2541_v56 = vpop.f32.mrf.mxu1 }
 0x8fb   :  { %v1872_v57 = vmul.f32 1.442695, %v2541_v56 }
 0x8fc   :  { %v1847_v58 = vpop.f32.mrf.mxu1 }
 0x8fd   :  { %v1870_v59 = vmul.f32 1.442695, %v1847_v58  ;;  %1914 = vrot.lane.b32.xlu1 %v1847_v58, %s2739_s14  ;;  %2690 = vpow2.f32 %v1872_v57 }
 0x8fe   :  { %v2544_v60 = vpop.f32.mrf.mxu1 }
 0x8ff   :  { %2692 = vpow2.f32 %v1870_v59  ;;  %v1876_v61 = vmul.f32 1.442695, %v2544_v60 }
 0x900   :  { %v1857_v62 = vpop.f32.mrf.mxu1 }
 0x901   :  { %1916 = vrot.lane.b32.xlu1 %v2541_v56, %s2739_s14  ;;  %2694 = vpow2.f32 %v1876_v61  ;;  %v1874_v3 = vmul.f32 1.442695, %v1857_v62 }
 0x903   :  { %2696 = vpow2.f32 %v1874_v3 }
 0x904   :  { %2698 = vpow2.f32 %v1868_v8 }
 0x905   :  { %1920 = vrot.lane.b32.xlu1 %v2544_v60, %s2739_s14  ;;  %2700 = vpow2.f32 %v1866_v10 }
 0x90a   :  { %v2691_v9 = vpop.eup %2690 }
 0x90b   :  { %v1887_v13 = vsel %vm265_vm3, %v2691_v9, 0.0 }
 0x90c   :  { %v2693_v14 = vpop.eup %2692  ;;  %1888 = vadd.xlane.f32.xlu0 %v1887_v13 }
 0x90d   :  { %v1884_v15 = vsel %vm265_vm3, %v2693_v14, 0.0 }
 0x90e   :  { %v2695_v19 = vpop.eup %2694 }
 0x90f   :  { %v1893_v23 = vsel %vm265_vm3, %v2695_v19, 0.0 }
 0x910   :  { %1885 = vadd.xlane.f32.xlu0 %v1884_v15  ;;  %v3395_v30 = vpop.eup %2696 }
 0x911   :  { %v1890_v12 = vsel %vm265_vm3, %v3395_v30, 0.0  ;;  %v2699_v0 = vpop.eup %2698 }
 0x912   :  { %v1881_v17 = vsel %vm95_vm1, %v2699_v0, 0.0  ;;  %v2701_v11 = vpop.eup %2700 }
 0x913   :  { %v1878_v18 = vsel %vm95_vm1, %v2701_v11, 0.0  ;;  %2702 = vrcp.f32 %v2701_v11 }
 0x914   :  { %1894 = vadd.xlane.f32.xlu0 %v1893_v23  ;;  %2704 = vrcp.f32 %v2693_v14 }
 0x915   :  { %2706 = vrcp.f32 %v2691_v9 }
 0x916   :  { %2708 = vrcp.f32 %v2695_v19 }
 0x917   :  { %2710 = vrcp.f32 %v2699_v0 }
 0x918   :  { %1891 = vadd.xlane.f32.xlu0 %v1890_v12  ;;  %2712 = vrcp.f32 %v3395_v30 }
 0x91c   :  { %1882 = vadd.xlane.f32.xlu0 %v1881_v17 }
 0x920   :  { %1879 = vadd.xlane.f32.xlu0 %v1878_v18  ;;  %v2703_v29 = vpop.eup %2702 }
 0x921   :  { %v2705_v27 = vpop.eup %2704 }
 0x922   :  { %v2707_v26 = vpop.eup %2706 }
 0x923   :  { %v2709_v45 = vpop.eup %2708 }
 0x936   :  { %1900 = vrot.lane.b32.xlu0 %v2514_v4, %s2738_s29 }
 0x93a   :  { %1918 = vrot.lane.b32.xlu0 %v1857_v62, %s2739_s14  ;;  %v2711_v62 = vpop.eup %2710 }
 0x93b   :  { %v2713_v13 = vpop.eup %2712 }
 0x95f   :  { %v1899_v41 = vpop.permute.xlu1 %1898 }
 0x960   :  { %v1904_v52 = vsub.f32 %v3132_v37, %v1899_v41 }
 0x962   :  { %v1908_v42 = vmul.f32 %v2703_v29, %v1904_v52 }
 0x964   :  { %v2108_v28 = vsel %vm95_vm1, %v1908_v42, %v3247_v22 }
 0x965   :  { %2111 = vst.msk [vmem:[%s3502_s20] sm:$0xff] %vm2110_vm7, %v2108_v28 }
 0x96f   :  { %v1915_v53 = vpop.permute.xlu1 %1914 }
 0x970   :  { %v1926_v50 = vsub.f32 %v3142_v43, %v1915_v53 }
 0x972   :  { %v1934_v51 = vmul.f32 %v2705_v27, %v1926_v50 }
 0x973   :  { %v1917_v37 = vpop.permute.xlu1 %1916 }
 0x974   :  { %v2113_v2 = vsel %vm265_vm3, %v1934_v51, %v3257_v32  ;;  %v1927_v49 = vsub.f32 %v3144_v44, %v1917_v37 }
 0x975   :  { %2117 = vst.msk [vmem:[%s3503_s21] sm:$0xff] %vm95_vm1, %v2113_v2 }
 0x976   :  { %v1935_v22 = vmul.f32 %v2707_v26, %v1927_v49 }
 0x977   :  { %v1921_v48 = vpop.permute.xlu1 %1920 }
 0x978   :  { %v2114_v1 = vsel %vm265_vm3, %v1935_v22, %v3252_v31  ;;  %v1929_v43 = vsub.f32 %v3154_v55, %v1921_v48  ;;  %v1949_v55 = vsel %vm1938_vm5, %v3312_v24, %v3314_v47  ;;  %v76_v47 = vld [vmem:[%s3520_s5] sm:$0x3] }
 0x979   :  { %2118 = vst.msk [vmem:[%s3503_s21 + $0x8] sm:$0xff] %vm95_vm1, %v2114_v1  ;;  %v1953_v5 = vsel %vm265_vm3, %v1949_v55, %v3316_v6 }
 0x97a   :  { %v1937_v44 = vmul.f32 %v2709_v45, %v1929_v43 }
 0x97c   :  { %v2116_v32 = vsel %vm265_vm3, %v1937_v44, %v3262_v34 }
 0x97d   :  { %2120 = vst.msk [vmem:[%s3503_s21 + $0x18] sm:$0xff] %vm95_vm1, %v2116_v32 }
 0x995   :  { %v1889_v46 = vpop.xlane.xlu0 %1888 }
 0x996   :  { %v1955_v57 = vsel %vm1943_vm8, %v3348_v20, %v1889_v46 }
 0x999   :  { %v1886_v31 = vpop.xlane.xlu0 %1885 }
 0x99a   :  { %v1954_v6 = vsel %vm1943_vm8, %v3355_v33, %v1886_v31  ;;  %v75_v33 = vld [vmem:[%s3521_s6] sm:$0x3] }
 0x99d   :  { %v1895_v4 = vpop.xlane.xlu0 %1894 }
 0x99e   :  { %v1957_v7 = vsel %vm1943_vm8, %v1953_v5, %v1895_v4 }
 0x99f   :  { %2546 = vmatpush3.msra.mxu0 %v1957_v7 }
 0x9a0   :  { %2547 = vmatprep.subr.mxu0 %v2740_v21 }
 0x9a1   :  { %v1892_v34 = vpop.xlane.xlu0 %1891 }
 0x9a2   :  { %v1956_v56 = vsel %vm1943_vm8, %v3332_v63, %v1892_v34  ;;  %v1939_v63 = vsel %vm1938_vm5, %v482_v25, %v952_v36 }
 0x9a3   :  { %2548 = vmatpush3.msra.mxu0 %v1956_v56  ;;  %v1941_v58 = vsel %vm265_vm3, %v1939_v63, %v1410_v40 }
 0x9a4   :  { %2549 = vmatprep.subr.mxu0 %v2740_v21 }
 0x9a5   :  { %2550 = vmatpush3.msra.mxu0 %v1955_v57  ;;  %v1883_v24 = vpop.xlane.xlu0 %1882 }
 0x9a6   :  { %2551 = vmatprep.subr.mxu0 %v2740_v21  ;;  %v1945_v20 = vsel %vm1943_vm8, %v3359_v39, %v1883_v24 }
 0x9a7   :  { %2552 = vmatpush3.msra.mxu0 %v1954_v6 }
 0x9a8   :  { %2554 = vmatmul.mubr.msk.f32.vlgmr.msra.gmra.mxu0 %vm1958_vm9, %v76_v47  ;;  %2556 = vmatprep.subr.mxu0 %v2740_v21 }
 0x9a9   :  { %2557 = vmatpush3.msra.mxu0 %v1945_v20  ;;  %v1880_v59 = vpop.xlane.xlu0 %1879  ;;  %2560 = vmatprep.mubr.msk.f32.mxu0 %vm2741_vm6, %v2740_v21 }
 0x9aa   :  { %v1944_v60 = vsel %vm1943_vm8, %v1941_v58, %v1880_v59  ;;  %2558 = vmatprep.subr.mxu0 %v2740_v21 }
 0x9ab   :  { %2559 = vmatpush3.msra.mxu0 %v1944_v60 }
 0x9ac   :  { %2561 = vmatmul.mubr.msk.f32.vlgmr.msra.gmra.mxu0 %vm2032_vm10, %v75_v33 }
 0x9ad   :  { %v1901_v39 = vpop.permute.xlu0 %1900 }
 0x9ae   :  { %v1905_v61 = vsub.f32 %v3134_v38, %v1901_v39 }
 0x9b0   :  { %v1909_v3 = vmul.f32 %v2711_v62, %v1905_v61 }
 0x9b1   :  { %v1919_v8 = vpop.permute.xlu0 %1918 }
 0x9b2   :  { %v2109_v9 = vsel %vm95_vm1, %v1909_v3, %v3244_v16  ;;  %v1928_v10 = vsub.f32 %v3152_v54, %v1919_v8 }
 0x9b3   :  { %2112 = vst.msk [vmem:[%s3502_s20 + $0x8] sm:$0xff] %vm2110_vm7, %v2109_v9  ;;  %s2714_s20 = scalar_lea.vmem %s2132_s26, 32 }
 0x9b4   :  { %v1936_v14 = vmul.f32 %v2713_v13, %v1928_v10  ;;  %p2715_p0 = scmp.ne.s32.totalorder %s2132_s26, %s2714_s20  ;;  %p2720_p2 = scmp.lt.s32.totalorder %s2714_s20, %s2714_s20 }
 0x9b6   :  { %v2115_v15 = vsel %vm265_vm3, %v1936_v14, %v3266_v35  ;;  %p2721_p3 = por %p2720_p2, %p2719_p1 }
 0x9b7   :  { %2119 = vst.msk [vmem:[%s3503_s21 + $0x10] sm:$0xff] %vm95_vm1, %v2115_v15 }
 0x9b8   :  { %p2722_p4 = pnand %p2721_p3, %p2715_p0 }
 0xa68   :  { %v2028_v38 = vpop.f32.mrf.mxu0 }
 0xa6a   :  { %v2555_v19 = vpop.f32.mrf.mxu0 }
 0xa6c   :  { %v2102_v54 = vpop.f32.mrf.mxu0 }
 0xa6d   :  { %v2103_v16 = vadd.f32 %v2102_v54, %v2028_v38 }
 0xa6e   :  { %v2562_v23 = vpop.f32.mrf.mxu0 }
 0xa6f   :  { %2107 = vst.msk [vmem:[#allocation2] sm:$0x3] %vm2106_vm11, %v2103_v16 }
 0xa70   :  { %2725 = shalt.err (!%p2722_p4)
}
 0xa71   :  { %2134 = dma.vmem_to_hbm [thread:$0]  %s2132_s26, 32, %s3504_s22, [#allocation3]  }
 0xa72   :  { %2734 = dma.done.wait [#allocation3], 32  }
 0xa73   :  { %2735 = vsyncadd [#allocation3], 4294967264 }
 0xa74   :  { %2142 = vsyncpa [#allocation3], 1 }

</bundles_post_ra>
